<compile_context>
chip_gen: v6e
topology: v6e:2x2x1
jax: 0.10.0
libtpu: 0.0.40
codegen_flags: <defaults>
</compile_context>

<pallas_src>
import jax
import jax.numpy as jnp
import numpy as np
from jax.experimental import pallas as pl
from jax.experimental.pallas import tpu as pltpu

_LANE = 128  # slab lane width (padded columns)


def _round8(n):
    return ((n + 7) // 8) * 8


def _slab_layout(input_size, features_size, hs, he):
    """Row layout of the packed parameter slab. Each block is [W; bias_row],
    8-row aligned so in-kernel static slices stay sublane-aligned."""
    specs = [
        ("enc1", input_size, he, True),
        ("enc2", he, he, True),
        ("rnn0_ih", he, hs, True),     # bias row = b_ih0 + b_hh0 (pre-folded)
        ("rnn0_hh", hs, hs, False),
        ("rnn1_ih", hs, hs, True),     # bias row = b_ih1 + b_hh1 (pre-folded)
        ("rnn1_hh", hs, hs, False),
        ("sh1", hs, hs, True),
        ("sh2", hs, hs, True),
        ("ft1", features_size, features_size, True),
        ("ft2", features_size, features_size, True),
        ("fin1", hs + features_size, hs + features_size, True),
        ("fin2", hs + features_size, 1, True),
    ]
    layout, off = {}, 0
    for name, rows, cols, has_b in specs:
        layout[name] = (off, rows, cols, has_b)
        off += _round8(rows + int(has_b))
    return layout, off


def pack_params(params, input_size, features_size, hs, he):
    """Pack the 24 per-Linear tensors into one [total_rows, 128] f32 slab."""
    (we1, be1, we2, be2,
     wih0, whh0, bih0, bhh0,
     wih1, whh1, bih1, bhh1,
     ws1, bs1, ws2, bs2,
     wf1, bf1, wf2, bf2,
     wo1, bo1, wo2, bo2) = [np.asarray(p, np.float32) for p in params]

    layout, total_rows = _slab_layout(input_size, features_size, hs, he)
    slab = np.zeros((total_rows, _LANE), np.float32)

    def put(name, w, b=None):
        off, rows, cols, _ = layout[name]
        slab[off:off + rows, :cols] = w
        if b is not None:
            slab[off + rows, :cols] = np.asarray(b).reshape(-1)

    put("enc1", we1, be1)
    put("enc2", we2, be2)
    put("rnn0_ih", wih0, bih0.reshape(-1) + bhh0.reshape(-1))
    put("rnn0_hh", whh0)
    put("rnn1_ih", wih1, bih1.reshape(-1) + bhh1.reshape(-1))
    put("rnn1_hh", whh1)
    put("sh1", ws1, bs1)
    put("sh2", ws2, bs2)
    put("ft1", wf1, bf1)
    put("ft2", wf2, bf2)
    put("fin1", wo1, bo1)
    put("fin2", wo2, bo2)
    return jnp.asarray(slab), layout


def _build_kernel(T, B, input_size, features_size, hs, he, layout):
    f32, bf16 = jnp.float32, jnp.bfloat16
    fs = features_size

    def kernel(x_ref, feat_ref, w_ref, out_ref, hid_ref):
        def ld_w(name, lo=None, hi=None):
            off, rows, cols, _ = layout[name]
            lo = 0 if lo is None else lo
            hi = rows if hi is None else hi
            return w_ref[off + lo:off + hi, :cols]

        def ld_b(name):
            off, rows, cols, _ = layout[name]
            return w_ref[off + rows:off + rows + 1, :cols]      # (1, cols)

        def mm(a, w):
            # single-pass bf16 MXU matmul, f32 accumulation
            return jnp.dot(a.astype(bf16), w.astype(bf16),
                           preferred_element_type=f32)

        # ---- encoding MLP, batched over all (t, b) positions ----
        x = x_ref[...].reshape(T * B, input_size)
        h = jnp.maximum(mm(x, ld_w("enc1")) + ld_b("enc1"), 0.0)
        enc = mm(h, ld_w("enc2")) + ld_b("enc2")                 # [T*B, he]

        # ---- layer-0 input projection + fused biases hoisted out of the loop
        enc_proj = mm(enc, ld_w("rnn0_ih")) + ld_b("rnn0_ih")    # [T*B, hs]

        # recurrent weights loaded + cast to bf16 once (not per step)
        whh0 = ld_w("rnn0_hh").astype(bf16)
        wih1 = ld_w("rnn1_ih").astype(bf16)
        whh1 = ld_w("rnn1_hh").astype(bf16)
        b1 = jnp.broadcast_to(ld_b("rnn1_ih"), (B, hs))          # hoisted broadcast

        def rmm(a, w_b16):
            return jnp.dot(a.astype(bf16), w_b16, preferred_element_type=f32)

        # ---- fused 2-layer tanh RNN, unrolled over static T ----
        h0 = jnp.zeros((B, hs), f32)
        h1 = jnp.zeros((B, hs), f32)
        for t in range(T):
            h0 = jnp.tanh(enc_proj[t * B:(t + 1) * B, :] + rmm(h0, whh0))
            h1 = jnp.tanh(rmm(h0, wih1) + rmm(h1, whh1) + b1)
            hid_ref[t * B:(t + 1) * B, :] = h1                   # direct VMEM write

        # ---- shared MLP batched over T*B hidden states ----
        hid = hid_ref[...]
        s = jnp.maximum(mm(hid, ld_w("sh1")) + ld_b("sh1"), 0.0)
        s = mm(s, ld_w("sh2")) + ld_b("sh2")                     # [T*B, hs]

        # ---- max pool over time (rows are (t, b) ordered) ----
        pooled = s[0:B, :]
        for t in range(1, T):
            pooled = jnp.maximum(pooled, s[t * B:(t + 1) * B, :])  # [B, hs]

        # ---- features MLP ----
        f = feat_ref[...]
        f = jnp.maximum(mm(f, ld_w("ft1")) + ld_b("ft1"), 0.0)
        f = mm(f, ld_w("ft2")) + ld_b("ft2")                     # [B, fs]

        # ---- final MLP: split wo1 rows -> no lane-axis concatenate ----
        c = (mm(pooled, ld_w("fin1", 0, hs))
             + mm(f, ld_w("fin1", hs, hs + fs))
             + ld_b("fin1"))
        c = jnp.maximum(c, 0.0)
        out_ref[...] = mm(c, ld_w("fin2")) + ld_b("fin2")        # [B, 1]

    return kernel


def oligo_rnn_forward(x, feat, slab, layout, *, hidden_size, hidden_size_enc):
    """x: [T, B, input_size], feat: [B, fs], slab: packed params -> [B] scores."""
    T, B, input_size = x.shape
    fs = feat.shape[1]
    hs, he = hidden_size, hidden_size_enc

    kernel = _build_kernel(T, B, input_size, fs, hs, he, layout)
    vmem = lambda: pl.BlockSpec(memory_space=pltpu.MemorySpace.VMEM)

    flops = 2 * (T * B * (input_size * he + he * he + he * hs)   # enc MLP + in-proj
                 + T * (3 * B * hs * hs)                         # recurrence
                 + T * B * (2 * hs * hs)                         # shared MLP
                 + B * (2 * fs * fs)                             # features MLP
                 + B * ((hs + fs) * (hs + fs) + (hs + fs)))      # final MLP
    cost = pl.CostEstimate(
        flops=int(flops),
        transcendentals=int(2 * T * B * hs),                     # tanh
        bytes_accessed=int(4 * (x.size + feat.size + slab.size + B)),
    )

    out = pl.pallas_call(
        kernel,
        out_shape=jax.ShapeDtypeStruct((B, 1), jnp.float32),
        in_specs=[vmem(), vmem(), vmem()],
        out_specs=vmem(),
        scratch_shapes=[pltpu.VMEM((T * B, hs), jnp.float32)],
        cost_estimate=cost,
    )(x, feat, slab)
    return out.reshape(-1)   # .flatten() in the PyTorch module


# --------------------------------------------------------------------------
# Deterministic parameter init (shapes follow OligoRNN.__init__) + pure-JAX ref
# --------------------------------------------------------------------------
def init_params(key, input_size, features_size, hidden_size, hidden_size_enc):
    hs, he, fs = hidden_size, hidden_size_enc, features_size
    shapes = [
        # encoding MLP (n_layers_encoder=1): Linear(in,he), ReLU, Linear(he,he)
        (input_size, he), (1, he), (he, he), (1, he),
        # RNN layer 0 (input he -> hs)
        (he, hs), (hs, hs), (1, hs), (1, hs),
        # RNN layer 1 (input hs -> hs)
        (hs, hs), (hs, hs), (1, hs), (1, hs),
        # shared MLP (n_layers_mlp=1): Linear(hs,hs), ReLU, Linear(hs,hs)
        (hs, hs), (1, hs), (hs, hs), (1, hs),
        # features MLP: Linear(fs,fs), ReLU, Linear(fs,fs)
        (fs, fs), (1, fs), (fs, fs), (1, fs),
        # final MLP: Linear(hs+fs,hs+fs), ReLU, Linear(hs+fs,1)
        (hs + fs, hs + fs), (1, hs + fs), (hs + fs, 1), (1, 1),
    ]
    keys = jax.random.split(key, len(shapes))
    return tuple((0.2 * jax.random.normal(k, s)).astype(jnp.float32)
                 for k, s in zip(keys, shapes))


def reference_forward(x, feat, params):
    """Pure-JAX reference in the straightforward PyTorch order (same bf16-in /
    f32-acc matmul precision as the kernel)."""
    (we1, be1, we2, be2,
     wih0, whh0, bih0, bhh0,
     wih1, whh1, bih1, bhh1,
     ws1, bs1, ws2, bs2,
     wf1, bf1, wf2, bf2,
     wo1, bo1, wo2, bo2) = params
    bf16, f32 = jnp.bfloat16, jnp.float32

    def mm(a, w):
        return jnp.dot(a.astype(bf16), w.astype(bf16), preferred_element_type=f32)

    T, B, D = x.shape
    h = jnp.maximum(mm(x.reshape(T * B, D), we1) + be1, 0.0)
    enc = (mm(h, we2) + be2).reshape(T, B, -1)

    def rnn_layer(inp, wih, whh, bih, bhh):
        hprev = jnp.zeros((B, whh.shape[0]), f32)
        outs = []
        for t in range(T):
            hprev = jnp.tanh(mm(inp[t], wih) + mm(hprev, whh) + bih + bhh)
            outs.append(hprev)
        return jnp.stack(outs, axis=0)

    l0 = rnn_layer(enc, wih0, whh0, bih0, bhh0)
    l1 = rnn_layer(l0, wih1, whh1, bih1, bhh1)
    hid = l1.reshape(T * B, -1)
    s = jnp.maximum(mm(hid, ws1) + bs1, 0.0)
    s = (mm(s, ws2) + bs2).reshape(T, B, -1)
    pooled = jnp.max(s, axis=0)
    f = jnp.maximum(mm(feat, wf1) + bf1, 0.0)
    f = mm(f, wf2) + bf2
    c = jnp.concatenate([pooled, f], axis=1)
    c = jnp.maximum(mm(c, wo1) + bo1, 0.0)
    return (mm(c, wo2) + bo2).reshape(-1)


if __name__ == "__main__":
    # Small shapes consistent with the module's forward:
    # seq length T=8, batch B=2, nucleotide-pair embedding input_size=8,
    # features_size=4, hidden_size=32, hidden_size_encoder=16, RNN n_layers=2.
    T, B = 8, 2
    input_size, features_size = 8, 4
    hidden_size, hidden_size_enc = 32, 16

    key = jax.random.PRNGKey(0)
    kx, kf, kp = jax.random.split(key, 3)
    x = jax.random.normal(kx, (T, B, input_size), dtype=jnp.float32)
    feat = jax.random.normal(kf, (B, features_size), dtype=jnp.float32)
    params = init_params(kp, input_size, features_size, hidden_size, hidden_size_enc)

    slab, layout = pack_params(params, input_size, features_size,
                               hidden_size, hidden_size_enc)

    out = oligo_rnn_forward(x, feat, slab, layout,
                            hidden_size=hidden_size,
                            hidden_size_enc=hidden_size_enc)
    out = jax.block_until_ready(out)

    ref = reference_forward(x, feat, params)
    # bf16-input / f32-accumulate matmuls + reordered (mathematically equal)
    # bias/projection sums -> compare at a bf16-appropriate tolerance.
    np.testing.assert_allclose(np.asarray(out), np.asarray(ref),
                               rtol=2e-2, atol=2e-2)

    print("KERNEL_OK")
</pallas_src>

<mosaic_0001>
module attributes {stable_mosaic.version = 11 : i64} {
  func.func @kernel(%arg0: memref<8x2x8xf32, #tpu.memory_space<vmem>>, %arg1: memref<2x4xf32, #tpu.memory_space<vmem>>, %arg2: memref<344x128xf32, #tpu.memory_space<vmem>>, %arg3: memref<2x1xf32, #tpu.memory_space<vmem>>, %arg4: memref<16x32xf32, #tpu.memory_space<vmem>>) attributes {dimension_semantics = [], scalar_prefetch = 0 : i64, scratch_operands = 1 : i64, tpu.core_type = #tpu.core_type<tc>} {
    %c0 = arith.constant 0 : index
    %c0_0 = arith.constant 0 : index
    %c0_1 = arith.constant 0 : index
    %0 = vector.load %arg0[%c0, %c0_0, %c0_1] : memref<8x2x8xf32, #tpu.memory_space<vmem>>, vector<8x2x8xf32>
    %1 = vector.shape_cast %0 : vector<8x2x8xf32> to vector<16x8xf32>
    %c0_2 = arith.constant 0 : index
    %c0_3 = arith.constant 0 : index
    %2 = vector.load %arg2[%c0_2, %c0_3] : memref<344x128xf32, #tpu.memory_space<vmem>>, vector<8x16xf32>
    %3 = arith.truncf %1 : vector<16x8xf32> to vector<16x8xbf16>
    %4 = arith.truncf %2 : vector<8x16xf32> to vector<8x16xbf16>
    %cst = arith.constant dense<0.000000e+00> : vector<16x16xf32>
    %5 = tpu.matmul %3, %4, %cst {dimension_numbers = #tpu.dot_dimension_numbers<[1], [0], [0], [1], [0, 0, 1, 1], [], []>} : vector<16x8xbf16>, vector<8x16xbf16>, vector<16x16xf32> -> vector<16x16xf32>
    %c8 = arith.constant 8 : index
    %c0_4 = arith.constant 0 : index
    %6 = vector.load %arg2[%c8, %c0_4] : memref<344x128xf32, #tpu.memory_space<vmem>>, vector<1x16xf32>
    %7 = vector.broadcast %6 : vector<1x16xf32> to vector<16x16xf32>
    %8 = arith.addf %5, %7 : vector<16x16xf32>
    %cst_5 = arith.constant 0.000000e+00 : f32
    %9 = vector.broadcast %cst_5 : f32 to vector<16x16xf32>
    %10 = arith.maximumf %8, %9 : vector<16x16xf32>
    %c16 = arith.constant 16 : index
    %c0_6 = arith.constant 0 : index
    %11 = vector.load %arg2[%c16, %c0_6] : memref<344x128xf32, #tpu.memory_space<vmem>>, vector<16x16xf32>
    %12 = arith.truncf %10 : vector<16x16xf32> to vector<16x16xbf16>
    %13 = arith.truncf %11 : vector<16x16xf32> to vector<16x16xbf16>
    %cst_7 = arith.constant dense<0.000000e+00> : vector<16x16xf32>
    %14 = tpu.matmul %12, %13, %cst_7 {dimension_numbers = #tpu.dot_dimension_numbers<[1], [0], [0], [1], [0, 0, 1, 1], [], []>} : vector<16x16xbf16>, vector<16x16xbf16>, vector<16x16xf32> -> vector<16x16xf32>
    %c32 = arith.constant 32 : index
    %c0_8 = arith.constant 0 : index
    %15 = vector.load %arg2[%c32, %c0_8] : memref<344x128xf32, #tpu.memory_space<vmem>>, vector<1x16xf32>
    %16 = vector.broadcast %15 : vector<1x16xf32> to vector<16x16xf32>
    %17 = arith.addf %14, %16 : vector<16x16xf32>
    %c40 = arith.constant 40 : index
    %c0_9 = arith.constant 0 : index
    %18 = vector.load %arg2[%c40, %c0_9] : memref<344x128xf32, #tpu.memory_space<vmem>>, vector<16x32xf32>
    %19 = arith.truncf %17 : vector<16x16xf32> to vector<16x16xbf16>
    %20 = arith.truncf %18 : vector<16x32xf32> to vector<16x32xbf16>
    %cst_10 = arith.constant dense<0.000000e+00> : vector<16x32xf32>
    %21 = tpu.matmul %19, %20, %cst_10 {dimension_numbers = #tpu.dot_dimension_numbers<[1], [0], [0], [1], [0, 0, 1, 1], [], []>} : vector<16x16xbf16>, vector<16x32xbf16>, vector<16x32xf32> -> vector<16x32xf32>
    %c56 = arith.constant 56 : index
    %c0_11 = arith.constant 0 : index
    %22 = vector.load %arg2[%c56, %c0_11] : memref<344x128xf32, #tpu.memory_space<vmem>>, vector<1x32xf32>
    %23 = vector.broadcast %22 : vector<1x32xf32> to vector<16x32xf32>
    %24 = arith.addf %21, %23 : vector<16x32xf32>
    %c64 = arith.constant 64 : index
    %c0_12 = arith.constant 0 : index
    %25 = vector.load %arg2[%c64, %c0_12] : memref<344x128xf32, #tpu.memory_space<vmem>>, vector<32x32xf32>
    %26 = arith.truncf %25 : vector<32x32xf32> to vector<32x32xbf16>
    %c96 = arith.constant 96 : index
    %c0_13 = arith.constant 0 : index
    %27 = vector.load %arg2[%c96, %c0_13] : memref<344x128xf32, #tpu.memory_space<vmem>>, vector<32x32xf32>
    %28 = arith.truncf %27 : vector<32x32xf32> to vector<32x32xbf16>
    %c136 = arith.constant 136 : index
    %c0_14 = arith.constant 0 : index
    %29 = vector.load %arg2[%c136, %c0_14] : memref<344x128xf32, #tpu.memory_space<vmem>>, vector<32x32xf32>
    %30 = arith.truncf %29 : vector<32x32xf32> to vector<32x32xbf16>
    %c128 = arith.constant 128 : index
    %c0_15 = arith.constant 0 : index
    %31 = vector.load %arg2[%c128, %c0_15] : memref<344x128xf32, #tpu.memory_space<vmem>>, vector<1x32xf32>
    %32 = vector.shape_cast %31 : vector<1x32xf32> to vector<1x32xf32>
    %33 = vector.broadcast %32 : vector<1x32xf32> to vector<2x32xf32>
    %cst_16 = arith.constant 0.000000e+00 : f32
    %34 = vector.broadcast %cst_16 : f32 to vector<2x32xf32>
    %cst_17 = arith.constant 0.000000e+00 : f32
    %35 = vector.broadcast %cst_17 : f32 to vector<2x32xf32>
    %36 = vector.extract_strided_slice %24 {offsets = [0, 0], sizes = [2, 32], strides = [1, 1]} : vector<16x32xf32> to vector<2x32xf32>
    %37 = arith.truncf %34 : vector<2x32xf32> to vector<2x32xbf16>
    %cst_18 = arith.constant dense<0.000000e+00> : vector<2x32xf32>
    %38 = tpu.matmul %37, %26, %cst_18 {dimension_numbers = #tpu.dot_dimension_numbers<[1], [0], [0], [1], [0, 0, 1, 1], [], []>} : vector<2x32xbf16>, vector<32x32xbf16>, vector<2x32xf32> -> vector<2x32xf32>
    %39 = arith.addf %36, %38 : vector<2x32xf32>
    %40 = math.tanh %39 : vector<2x32xf32>
    %41 = arith.truncf %40 : vector<2x32xf32> to vector<2x32xbf16>
    %cst_19 = arith.constant dense<0.000000e+00> : vector<2x32xf32>
    %42 = tpu.matmul %41, %28, %cst_19 {dimension_numbers = #tpu.dot_dimension_numbers<[1], [0], [0], [1], [0, 0, 1, 1], [], []>} : vector<2x32xbf16>, vector<32x32xbf16>, vector<2x32xf32> -> vector<2x32xf32>
    %43 = arith.truncf %35 : vector<2x32xf32> to vector<2x32xbf16>
    %cst_20 = arith.constant dense<0.000000e+00> : vector<2x32xf32>
    %44 = tpu.matmul %43, %30, %cst_20 {dimension_numbers = #tpu.dot_dimension_numbers<[1], [0], [0], [1], [0, 0, 1, 1], [], []>} : vector<2x32xbf16>, vector<32x32xbf16>, vector<2x32xf32> -> vector<2x32xf32>
    %45 = arith.addf %42, %44 : vector<2x32xf32>
    %46 = arith.addf %45, %33 : vector<2x32xf32>
    %47 = math.tanh %46 : vector<2x32xf32>
    %c0_21 = arith.constant 0 : index
    %c0_22 = arith.constant 0 : index
    %48 = vector.load %arg4[%c0_21, %c0_22] : memref<16x32xf32, #tpu.memory_space<vmem>>, vector<2x32xf32>
    tpu.vector_store %arg4[%c0_21, %c0_22], %47 {strides = array<i32>} : memref<16x32xf32, #tpu.memory_space<vmem>>, vector<2x32xf32>,
    %49 = vector.extract_strided_slice %24 {offsets = [2, 0], sizes = [2, 32], strides = [1, 1]} : vector<16x32xf32> to vector<2x32xf32>
    %50 = arith.truncf %40 : vector<2x32xf32> to vector<2x32xbf16>
    %cst_23 = arith.constant dense<0.000000e+00> : vector<2x32xf32>
    %51 = tpu.matmul %50, %26, %cst_23 {dimension_numbers = #tpu.dot_dimension_numbers<[1], [0], [0], [1], [0, 0, 1, 1], [], []>} : vector<2x32xbf16>, vector<32x32xbf16>, vector<2x32xf32> -> vector<2x32xf32>
    %52 = arith.addf %49, %51 : vector<2x32xf32>
    %53 = math.tanh %52 : vector<2x32xf32>
    %54 = arith.truncf %53 : vector<2x32xf32> to vector<2x32xbf16>
    %cst_24 = arith.constant dense<0.000000e+00> : vector<2x32xf32>
    %55 = tpu.matmul %54, %28, %cst_24 {dimension_numbers = #tpu.dot_dimension_numbers<[1], [0], [0], [1], [0, 0, 1, 1], [], []>} : vector<2x32xbf16>, vector<32x32xbf16>, vector<2x32xf32> -> vector<2x32xf32>
    %56 = arith.truncf %47 : vector<2x32xf32> to vector<2x32xbf16>
    %cst_25 = arith.constant dense<0.000000e+00> : vector<2x32xf32>
    %57 = tpu.matmul %56, %30, %cst_25 {dimension_numbers = #tpu.dot_dimension_numbers<[1], [0], [0], [1], [0, 0, 1, 1], [], []>} : vector<2x32xbf16>, vector<32x32xbf16>, vector<2x32xf32> -> vector<2x32xf32>
    %58 = arith.addf %55, %57 : vector<2x32xf32>
    %59 = arith.addf %58, %33 : vector<2x32xf32>
    %60 = math.tanh %59 : vector<2x32xf32>
    %c2 = arith.constant 2 : index
    %c0_26 = arith.constant 0 : index
    %61 = vector.load %arg4[%c2, %c0_26] : memref<16x32xf32, #tpu.memory_space<vmem>>, vector<2x32xf32>
    tpu.vector_store %arg4[%c2, %c0_26], %60 {strides = array<i32>} : memref<16x32xf32, #tpu.memory_space<vmem>>, vector<2x32xf32>,
    %62 = vector.extract_strided_slice %24 {offsets = [4, 0], sizes = [2, 32], strides = [1, 1]} : vector<16x32xf32> to vector<2x32xf32>
    %63 = arith.truncf %53 : vector<2x32xf32> to vector<2x32xbf16>
    %cst_27 = arith.constant dense<0.000000e+00> : vector<2x32xf32>
    %64 = tpu.matmul %63, %26, %cst_27 {dimension_numbers = #tpu.dot_dimension_numbers<[1], [0], [0], [1], [0, 0, 1, 1], [], []>} : vector<2x32xbf16>, vector<32x32xbf16>, vector<2x32xf32> -> vector<2x32xf32>
    %65 = arith.addf %62, %64 : vector<2x32xf32>
    %66 = math.tanh %65 : vector<2x32xf32>
    %67 = arith.truncf %66 : vector<2x32xf32> to vector<2x32xbf16>
    %cst_28 = arith.constant dense<0.000000e+00> : vector<2x32xf32>
    %68 = tpu.matmul %67, %28, %cst_28 {dimension_numbers = #tpu.dot_dimension_numbers<[1], [0], [0], [1], [0, 0, 1, 1], [], []>} : vector<2x32xbf16>, vector<32x32xbf16>, vector<2x32xf32> -> vector<2x32xf32>
    %69 = arith.truncf %60 : vector<2x32xf32> to vector<2x32xbf16>
    %cst_29 = arith.constant dense<0.000000e+00> : vector<2x32xf32>
    %70 = tpu.matmul %69, %30, %cst_29 {dimension_numbers = #tpu.dot_dimension_numbers<[1], [0], [0], [1], [0, 0, 1, 1], [], []>} : vector<2x32xbf16>, vector<32x32xbf16>, vector<2x32xf32> -> vector<2x32xf32>
    %71 = arith.addf %68, %70 : vector<2x32xf32>
    %72 = arith.addf %71, %33 : vector<2x32xf32>
    %73 = math.tanh %72 : vector<2x32xf32>
    %c4 = arith.constant 4 : index
    %c0_30 = arith.constant 0 : index
    %74 = vector.load %arg4[%c4, %c0_30] : memref<16x32xf32, #tpu.memory_space<vmem>>, vector<2x32xf32>
    tpu.vector_store %arg4[%c4, %c0_30], %73 {strides = array<i32>} : memref<16x32xf32, #tpu.memory_space<vmem>>, vector<2x32xf32>,
    %75 = vector.extract_strided_slice %24 {offsets = [6, 0], sizes = [2, 32], strides = [1, 1]} : vector<16x32xf32> to vector<2x32xf32>
    %76 = arith.truncf %66 : vector<2x32xf32> to vector<2x32xbf16>
    %cst_31 = arith.constant dense<0.000000e+00> : vector<2x32xf32>
    %77 = tpu.matmul %76, %26, %cst_31 {dimension_numbers = #tpu.dot_dimension_numbers<[1], [0], [0], [1], [0, 0, 1, 1], [], []>} : vector<2x32xbf16>, vector<32x32xbf16>, vector<2x32xf32> -> vector<2x32xf32>
    %78 = arith.addf %75, %77 : vector<2x32xf32>
    %79 = math.tanh %78 : vector<2x32xf32>
    %80 = arith.truncf %79 : vector<2x32xf32> to vector<2x32xbf16>
    %cst_32 = arith.constant dense<0.000000e+00> : vector<2x32xf32>
    %81 = tpu.matmul %80, %28, %cst_32 {dimension_numbers = #tpu.dot_dimension_numbers<[1], [0], [0], [1], [0, 0, 1, 1], [], []>} : vector<2x32xbf16>, vector<32x32xbf16>, vector<2x32xf32> -> vector<2x32xf32>
    %82 = arith.truncf %73 : vector<2x32xf32> to vector<2x32xbf16>
    %cst_33 = arith.constant dense<0.000000e+00> : vector<2x32xf32>
    %83 = tpu.matmul %82, %30, %cst_33 {dimension_numbers = #tpu.dot_dimension_numbers<[1], [0], [0], [1], [0, 0, 1, 1], [], []>} : vector<2x32xbf16>, vector<32x32xbf16>, vector<2x32xf32> -> vector<2x32xf32>
    %84 = arith.addf %81, %83 : vector<2x32xf32>
    %85 = arith.addf %84, %33 : vector<2x32xf32>
    %86 = math.tanh %85 : vector<2x32xf32>
    %c6 = arith.constant 6 : index
    %c0_34 = arith.constant 0 : index
    %87 = vector.load %arg4[%c6, %c0_34] : memref<16x32xf32, #tpu.memory_space<vmem>>, vector<2x32xf32>
    tpu.vector_store %arg4[%c6, %c0_34], %86 {strides = array<i32>} : memref<16x32xf32, #tpu.memory_space<vmem>>, vector<2x32xf32>,
    %88 = vector.extract_strided_slice %24 {offsets = [8, 0], sizes = [2, 32], strides = [1, 1]} : vector<16x32xf32> to vector<2x32xf32>
    %89 = arith.truncf %79 : vector<2x32xf32> to vector<2x32xbf16>
    %cst_35 = arith.constant dense<0.000000e+00> : vector<2x32xf32>
    %90 = tpu.matmul %89, %26, %cst_35 {dimension_numbers = #tpu.dot_dimension_numbers<[1], [0], [0], [1], [0, 0, 1, 1], [], []>} : vector<2x32xbf16>, vector<32x32xbf16>, vector<2x32xf32> -> vector<2x32xf32>
    %91 = arith.addf %88, %90 : vector<2x32xf32>
    %92 = math.tanh %91 : vector<2x32xf32>
    %93 = arith.truncf %92 : vector<2x32xf32> to vector<2x32xbf16>
    %cst_36 = arith.constant dense<0.000000e+00> : vector<2x32xf32>
    %94 = tpu.matmul %93, %28, %cst_36 {dimension_numbers = #tpu.dot_dimension_numbers<[1], [0], [0], [1], [0, 0, 1, 1], [], []>} : vector<2x32xbf16>, vector<32x32xbf16>, vector<2x32xf32> -> vector<2x32xf32>
    %95 = arith.truncf %86 : vector<2x32xf32> to vector<2x32xbf16>
    %cst_37 = arith.constant dense<0.000000e+00> : vector<2x32xf32>
    %96 = tpu.matmul %95, %30, %cst_37 {dimension_numbers = #tpu.dot_dimension_numbers<[1], [0], [0], [1], [0, 0, 1, 1], [], []>} : vector<2x32xbf16>, vector<32x32xbf16>, vector<2x32xf32> -> vector<2x32xf32>
    %97 = arith.addf %94, %96 : vector<2x32xf32>
    %98 = arith.addf %97, %33 : vector<2x32xf32>
    %99 = math.tanh %98 : vector<2x32xf32>
    %c8_38 = arith.constant 8 : index
    %c0_39 = arith.constant 0 : index
    %100 = vector.load %arg4[%c8_38, %c0_39] : memref<16x32xf32, #tpu.memory_space<vmem>>, vector<2x32xf32>
    tpu.vector_store %arg4[%c8_38, %c0_39], %99 {strides = array<i32>} : memref<16x32xf32, #tpu.memory_space<vmem>>, vector<2x32xf32>,
    %101 = vector.extract_strided_slice %24 {offsets = [10, 0], sizes = [2, 32], strides = [1, 1]} : vector<16x32xf32> to vector<2x32xf32>
    %102 = arith.truncf %92 : vector<2x32xf32> to vector<2x32xbf16>
    %cst_40 = arith.constant dense<0.000000e+00> : vector<2x32xf32>
    %103 = tpu.matmul %102, %26, %cst_40 {dimension_numbers = #tpu.dot_dimension_numbers<[1], [0], [0], [1], [0, 0, 1, 1], [], []>} : vector<2x32xbf16>, vector<32x32xbf16>, vector<2x32xf32> -> vector<2x32xf32>
    %104 = arith.addf %101, %103 : vector<2x32xf32>
    %105 = math.tanh %104 : vector<2x32xf32>
    %106 = arith.truncf %105 : vector<2x32xf32> to vector<2x32xbf16>
    %cst_41 = arith.constant dense<0.000000e+00> : vector<2x32xf32>
    %107 = tpu.matmul %106, %28, %cst_41 {dimension_numbers = #tpu.dot_dimension_numbers<[1], [0], [0], [1], [0, 0, 1, 1], [], []>} : vector<2x32xbf16>, vector<32x32xbf16>, vector<2x32xf32> -> vector<2x32xf32>
    %108 = arith.truncf %99 : vector<2x32xf32> to vector<2x32xbf16>
    %cst_42 = arith.constant dense<0.000000e+00> : vector<2x32xf32>
    %109 = tpu.matmul %108, %30, %cst_42 {dimension_numbers = #tpu.dot_dimension_numbers<[1], [0], [0], [1], [0, 0, 1, 1], [], []>} : vector<2x32xbf16>, vector<32x32xbf16>, vector<2x32xf32> -> vector<2x32xf32>
    %110 = arith.addf %107, %109 : vector<2x32xf32>
    %111 = arith.addf %110, %33 : vector<2x32xf32>
    %112 = math.tanh %111 : vector<2x32xf32>
    %c10 = arith.constant 10 : index
    %c0_43 = arith.constant 0 : index
    %113 = vector.load %arg4[%c10, %c0_43] : memref<16x32xf32, #tpu.memory_space<vmem>>, vector<2x32xf32>
    tpu.vector_store %arg4[%c10, %c0_43], %112 {strides = array<i32>} : memref<16x32xf32, #tpu.memory_space<vmem>>, vector<2x32xf32>,
    %114 = vector.extract_strided_slice %24 {offsets = [12, 0], sizes = [2, 32], strides = [1, 1]} : vector<16x32xf32> to vector<2x32xf32>
    %115 = arith.truncf %105 : vector<2x32xf32> to vector<2x32xbf16>
    %cst_44 = arith.constant dense<0.000000e+00> : vector<2x32xf32>
    %116 = tpu.matmul %115, %26, %cst_44 {dimension_numbers = #tpu.dot_dimension_numbers<[1], [0], [0], [1], [0, 0, 1, 1], [], []>} : vector<2x32xbf16>, vector<32x32xbf16>, vector<2x32xf32> -> vector<2x32xf32>
    %117 = arith.addf %114, %116 : vector<2x32xf32>
    %118 = math.tanh %117 : vector<2x32xf32>
    %119 = arith.truncf %118 : vector<2x32xf32> to vector<2x32xbf16>
    %cst_45 = arith.constant dense<0.000000e+00> : vector<2x32xf32>
    %120 = tpu.matmul %119, %28, %cst_45 {dimension_numbers = #tpu.dot_dimension_numbers<[1], [0], [0], [1], [0, 0, 1, 1], [], []>} : vector<2x32xbf16>, vector<32x32xbf16>, vector<2x32xf32> -> vector<2x32xf32>
    %121 = arith.truncf %112 : vector<2x32xf32> to vector<2x32xbf16>
    %cst_46 = arith.constant dense<0.000000e+00> : vector<2x32xf32>
    %122 = tpu.matmul %121, %30, %cst_46 {dimension_numbers = #tpu.dot_dimension_numbers<[1], [0], [0], [1], [0, 0, 1, 1], [], []>} : vector<2x32xbf16>, vector<32x32xbf16>, vector<2x32xf32> -> vector<2x32xf32>
    %123 = arith.addf %120, %122 : vector<2x32xf32>
    %124 = arith.addf %123, %33 : vector<2x32xf32>
    %125 = math.tanh %124 : vector<2x32xf32>
    %c12 = arith.constant 12 : index
    %c0_47 = arith.constant 0 : index
    %126 = vector.load %arg4[%c12, %c0_47] : memref<16x32xf32, #tpu.memory_space<vmem>>, vector<2x32xf32>
    tpu.vector_store %arg4[%c12, %c0_47], %125 {strides = array<i32>} : memref<16x32xf32, #tpu.memory_space<vmem>>, vector<2x32xf32>,
    %127 = vector.extract_strided_slice %24 {offsets = [14, 0], sizes = [2, 32], strides = [1, 1]} : vector<16x32xf32> to vector<2x32xf32>
    %128 = arith.truncf %118 : vector<2x32xf32> to vector<2x32xbf16>
    %cst_48 = arith.constant dense<0.000000e+00> : vector<2x32xf32>
    %129 = tpu.matmul %128, %26, %cst_48 {dimension_numbers = #tpu.dot_dimension_numbers<[1], [0], [0], [1], [0, 0, 1, 1], [], []>} : vector<2x32xbf16>, vector<32x32xbf16>, vector<2x32xf32> -> vector<2x32xf32>
    %130 = arith.addf %127, %129 : vector<2x32xf32>
    %131 = math.tanh %130 : vector<2x32xf32>
    %132 = arith.truncf %131 : vector<2x32xf32> to vector<2x32xbf16>
    %cst_49 = arith.constant dense<0.000000e+00> : vector<2x32xf32>
    %133 = tpu.matmul %132, %28, %cst_49 {dimension_numbers = #tpu.dot_dimension_numbers<[1], [0], [0], [1], [0, 0, 1, 1], [], []>} : vector<2x32xbf16>, vector<32x32xbf16>, vector<2x32xf32> -> vector<2x32xf32>
    %134 = arith.truncf %125 : vector<2x32xf32> to vector<2x32xbf16>
    %cst_50 = arith.constant dense<0.000000e+00> : vector<2x32xf32>
    %135 = tpu.matmul %134, %30, %cst_50 {dimension_numbers = #tpu.dot_dimension_numbers<[1], [0], [0], [1], [0, 0, 1, 1], [], []>} : vector<2x32xbf16>, vector<32x32xbf16>, vector<2x32xf32> -> vector<2x32xf32>
    %136 = arith.addf %133, %135 : vector<2x32xf32>
    %137 = arith.addf %136, %33 : vector<2x32xf32>
    %138 = math.tanh %137 : vector<2x32xf32>
    %c14 = arith.constant 14 : index
    %c0_51 = arith.constant 0 : index
    %139 = vector.load %arg4[%c14, %c0_51] : memref<16x32xf32, #tpu.memory_space<vmem>>, vector<2x32xf32>
    tpu.vector_store %arg4[%c14, %c0_51], %138 {strides = array<i32>} : memref<16x32xf32, #tpu.memory_space<vmem>>, vector<2x32xf32>,
    %c0_52 = arith.constant 0 : index
    %c0_53 = arith.constant 0 : index
    %140 = vector.load %arg4[%c0_52, %c0_53] : memref<16x32xf32, #tpu.memory_space<vmem>>, vector<16x32xf32>
    %c168 = arith.constant 168 : index
    %c0_54 = arith.constant 0 : index
    %141 = vector.load %arg2[%c168, %c0_54] : memref<344x128xf32, #tpu.memory_space<vmem>>, vector<32x32xf32>
    %142 = arith.truncf %140 : vector<16x32xf32> to vector<16x32xbf16>
    %143 = arith.truncf %141 : vector<32x32xf32> to vector<32x32xbf16>
    %cst_55 = arith.constant dense<0.000000e+00> : vector<16x32xf32>
    %144 = tpu.matmul %142, %143, %cst_55 {dimension_numbers = #tpu.dot_dimension_numbers<[1], [0], [0], [1], [0, 0, 1, 1], [], []>} : vector<16x32xbf16>, vector<32x32xbf16>, vector<16x32xf32> -> vector<16x32xf32>
    %c200 = arith.constant 200 : index
    %c0_56 = arith.constant 0 : index
    %145 = vector.load %arg2[%c200, %c0_56] : memref<344x128xf32, #tpu.memory_space<vmem>>, vector<1x32xf32>
    %146 = vector.broadcast %145 : vector<1x32xf32> to vector<16x32xf32>
    %147 = arith.addf %144, %146 : vector<16x32xf32>
    %cst_57 = arith.constant 0.000000e+00 : f32
    %148 = vector.broadcast %cst_57 : f32 to vector<16x32xf32>
    %149 = arith.maximumf %147, %148 : vector<16x32xf32>
    %c208 = arith.constant 208 : index
    %c0_58 = arith.constant 0 : index
    %150 = vector.load %arg2[%c208, %c0_58] : memref<344x128xf32, #tpu.memory_space<vmem>>, vector<32x32xf32>
    %151 = arith.truncf %149 : vector<16x32xf32> to vector<16x32xbf16>
    %152 = arith.truncf %150 : vector<32x32xf32> to vector<32x32xbf16>
    %cst_59 = arith.constant dense<0.000000e+00> : vector<16x32xf32>
    %153 = tpu.matmul %151, %152, %cst_59 {dimension_numbers = #tpu.dot_dimension_numbers<[1], [0], [0], [1], [0, 0, 1, 1], [], []>} : vector<16x32xbf16>, vector<32x32xbf16>, vector<16x32xf32> -> vector<16x32xf32>
    %c240 = arith.constant 240 : index
    %c0_60 = arith.constant 0 : index
    %154 = vector.load %arg2[%c240, %c0_60] : memref<344x128xf32, #tpu.memory_space<vmem>>, vector<1x32xf32>
    %155 = vector.broadcast %154 : vector<1x32xf32> to vector<16x32xf32>
    %156 = arith.addf %153, %155 : vector<16x32xf32>
    %157 = vector.extract_strided_slice %156 {offsets = [0, 0], sizes = [2, 32], strides = [1, 1]} : vector<16x32xf32> to vector<2x32xf32>
    %158 = vector.extract_strided_slice %156 {offsets = [2, 0], sizes = [2, 32], strides = [1, 1]} : vector<16x32xf32> to vector<2x32xf32>
    %159 = arith.maximumf %157, %158 : vector<2x32xf32>
    %160 = vector.extract_strided_slice %156 {offsets = [4, 0], sizes = [2, 32], strides = [1, 1]} : vector<16x32xf32> to vector<2x32xf32>
    %161 = arith.maximumf %159, %160 : vector<2x32xf32>
    %162 = vector.extract_strided_slice %156 {offsets = [6, 0], sizes = [2, 32], strides = [1, 1]} : vector<16x32xf32> to vector<2x32xf32>
    %163 = arith.maximumf %161, %162 : vector<2x32xf32>
    %164 = vector.extract_strided_slice %156 {offsets = [8, 0], sizes = [2, 32], strides = [1, 1]} : vector<16x32xf32> to vector<2x32xf32>
    %165 = arith.maximumf %163, %164 : vector<2x32xf32>
    %166 = vector.extract_strided_slice %156 {offsets = [10, 0], sizes = [2, 32], strides = [1, 1]} : vector<16x32xf32> to vector<2x32xf32>
    %167 = arith.maximumf %165, %166 : vector<2x32xf32>
    %168 = vector.extract_strided_slice %156 {offsets = [12, 0], sizes = [2, 32], strides = [1, 1]} : vector<16x32xf32> to vector<2x32xf32>
    %169 = arith.maximumf %167, %168 : vector<2x32xf32>
    %170 = vector.extract_strided_slice %156 {offsets = [14, 0], sizes = [2, 32], strides = [1, 1]} : vector<16x32xf32> to vector<2x32xf32>
    %171 = arith.maximumf %169, %170 : vector<2x32xf32>
    %c0_61 = arith.constant 0 : index
    %c0_62 = arith.constant 0 : index
    %172 = vector.load %arg1[%c0_61, %c0_62] : memref<2x4xf32, #tpu.memory_space<vmem>>, vector<2x4xf32>
    %c248 = arith.constant 248 : index
    %c0_63 = arith.constant 0 : index
    %173 = vector.load %arg2[%c248, %c0_63] : memref<344x128xf32, #tpu.memory_space<vmem>>, vector<4x4xf32>
    %174 = arith.truncf %172 : vector<2x4xf32> to vector<2x4xbf16>
    %175 = arith.truncf %173 : vector<4x4xf32> to vector<4x4xbf16>
    %cst_64 = arith.constant dense<0.000000e+00> : vector<2x4xf32>
    %176 = tpu.matmul %174, %175, %cst_64 {dimension_numbers = #tpu.dot_dimension_numbers<[1], [0], [0], [1], [0, 0, 1, 1], [], []>} : vector<2x4xbf16>, vector<4x4xbf16>, vector<2x4xf32> -> vector<2x4xf32>
    %c252 = arith.constant 252 : index
    %c0_65 = arith.constant 0 : index
    %177 = vector.load %arg2[%c252, %c0_65] : memref<344x128xf32, #tpu.memory_space<vmem>>, vector<1x4xf32>
    %178 = vector.broadcast %177 : vector<1x4xf32> to vector<2x4xf32>
    %179 = arith.addf %176, %178 : vector<2x4xf32>
    %cst_66 = arith.constant 0.000000e+00 : f32
    %180 = vector.broadcast %cst_66 : f32 to vector<2x4xf32>
    %181 = arith.maximumf %179, %180 : vector<2x4xf32>
    %c256 = arith.constant 256 : index
    %c0_67 = arith.constant 0 : index
    %182 = vector.load %arg2[%c256, %c0_67] : memref<344x128xf32, #tpu.memory_space<vmem>>, vector<4x4xf32>
    %183 = arith.truncf %181 : vector<2x4xf32> to vector<2x4xbf16>
    %184 = arith.truncf %182 : vector<4x4xf32> to vector<4x4xbf16>
    %cst_68 = arith.constant dense<0.000000e+00> : vector<2x4xf32>
    %185 = tpu.matmul %183, %184, %cst_68 {dimension_numbers = #tpu.dot_dimension_numbers<[1], [0], [0], [1], [0, 0, 1, 1], [], []>} : vector<2x4xbf16>, vector<4x4xbf16>, vector<2x4xf32> -> vector<2x4xf32>
    %c260 = arith.constant 260 : index
    %c0_69 = arith.constant 0 : index
    %186 = vector.load %arg2[%c260, %c0_69] : memref<344x128xf32, #tpu.memory_space<vmem>>, vector<1x4xf32>
    %187 = vector.broadcast %186 : vector<1x4xf32> to vector<2x4xf32>
    %188 = arith.addf %185, %187 : vector<2x4xf32>
    %c264 = arith.constant 264 : index
    %c0_70 = arith.constant 0 : index
    %189 = vector.load %arg2[%c264, %c0_70] : memref<344x128xf32, #tpu.memory_space<vmem>>, vector<32x36xf32>
    %190 = arith.truncf %171 : vector<2x32xf32> to vector<2x32xbf16>
    %191 = arith.truncf %189 : vector<32x36xf32> to vector<32x36xbf16>
    %cst_71 = arith.constant dense<0.000000e+00> : vector<2x36xf32>
    %192 = tpu.matmul %190, %191, %cst_71 {dimension_numbers = #tpu.dot_dimension_numbers<[1], [0], [0], [1], [0, 0, 1, 1], [], []>} : vector<2x32xbf16>, vector<32x36xbf16>, vector<2x36xf32> -> vector<2x36xf32>
    %c296 = arith.constant 296 : index
    %c0_72 = arith.constant 0 : index
    %193 = vector.load %arg2[%c296, %c0_72] : memref<344x128xf32, #tpu.memory_space<vmem>>, vector<4x36xf32>
    %194 = arith.truncf %188 : vector<2x4xf32> to vector<2x4xbf16>
    %195 = arith.truncf %193 : vector<4x36xf32> to vector<4x36xbf16>
    %cst_73 = arith.constant dense<0.000000e+00> : vector<2x36xf32>
    %196 = tpu.matmul %194, %195, %cst_73 {dimension_numbers = #tpu.dot_dimension_numbers<[1], [0], [0], [1], [0, 0, 1, 1], [], []>} : vector<2x4xbf16>, vector<4x36xbf16>, vector<2x36xf32> -> vector<2x36xf32>
    %197 = arith.addf %192, %196 : vector<2x36xf32>
    %c300 = arith.constant 300 : index
    %c0_74 = arith.constant 0 : index
    %198 = vector.load %arg2[%c300, %c0_74] : memref<344x128xf32, #tpu.memory_space<vmem>>, vector<1x36xf32>
    %199 = vector.broadcast %198 : vector<1x36xf32> to vector<2x36xf32>
    %200 = arith.addf %197, %199 : vector<2x36xf32>
    %cst_75 = arith.constant 0.000000e+00 : f32
    %201 = vector.broadcast %cst_75 : f32 to vector<2x36xf32>
    %202 = arith.maximumf %200, %201 : vector<2x36xf32>
    %c304 = arith.constant 304 : index
    %c0_76 = arith.constant 0 : index
    %203 = vector.load %arg2[%c304, %c0_76] : memref<344x128xf32, #tpu.memory_space<vmem>>, vector<36x1xf32>
    %204 = arith.truncf %202 : vector<2x36xf32> to vector<2x36xbf16>
    %205 = arith.truncf %203 : vector<36x1xf32> to vector<36x1xbf16>
    %cst_77 = arith.constant dense<0.000000e+00> : vector<2x1xf32>
    %206 = tpu.matmul %204, %205, %cst_77 {dimension_numbers = #tpu.dot_dimension_numbers<[1], [0], [0], [1], [0, 0, 1, 1], [], []>} : vector<2x36xbf16>, vector<36x1xbf16>, vector<2x1xf32> -> vector<2x1xf32>
    %c340 = arith.constant 340 : index
    %c0_78 = arith.constant 0 : index
    %207 = vector.load %arg2[%c340, %c0_78] : memref<344x128xf32, #tpu.memory_space<vmem>>, vector<1x1xf32>
    %208 = vector.broadcast %207 : vector<1x1xf32> to vector<2x1xf32>
    %209 = arith.addf %206, %208 : vector<2x1xf32>
    %c0_79 = arith.constant 0 : index
    %c0_80 = arith.constant 0 : index
    %210 = vector.load %arg3[%c0_79, %c0_80] : memref<2x1xf32, #tpu.memory_space<vmem>>, vector<2x1xf32>
    tpu.vector_store %arg3[%c0_79, %c0_80], %209 {strides = array<i32>} : memref<2x1xf32, #tpu.memory_space<vmem>>, vector<2x1xf32>,
    return
  }
}

</mosaic_0001>

<bundles_post_ra>
// kernel: tpu_custom_call.1
= control target key start
LH: loop header
LB: loop body
LE: loop exit
PB: predicated region body
PF: predicated region fallthrough
CT: control target
= control target key end

     0   :  { %8 = vsyncpa [#allocation4], 0  ;;  %s2620_s0 = inlined_call_operand.hbm [shape: f32[8,2,8], index: 0, kind: input, shape index: {}]   ;;  %s2621_s1 = inlined_call_operand.hbm [shape: f32[2,4], index: 1, kind: input, shape index: {}]   ;;  %s2622_s2 = inlined_call_operand.hbm [shape: f32[344,128], index: 2, kind: input, shape index: {}]   ;;  %s2623_s3 = inlined_call_operand.vmem [shape: f32[2,1], index: 3, kind: output, shape index: {}]  }
   0x1   :  { %9 = vsyncpa [#allocation6], 0  ;;  %s2322_s12 = smov [#allocation5]   ;;  %s2323_s14 = smov [#allocation3]  }
   0x2   :  { %s28_s13 = sshll.u32 %s2322_s12, 4  ;;  %s15_s15 = sshll.u32 %s2323_s14, 4  ;;  %s29_s13 = int_to_ptr.vmem [resolvable:$true] %s28_s13  ;;  %s16_s15 = int_to_ptr.vmem [resolvable:$true] %s15_s15 }
   0x3   :  { %s2266_s16 = scalar_lea.vmem %s29_s13, 32  ;;  %p2271_p1 = scmp.lt.s32.totalorder %s29_s13, %s29_s13 }
   0x4   :  { %p2267_p0 = scmp.ne.s32.totalorder %s29_s13, %s2266_s16  ;;  %p2272_p2 = scmp.lt.s32.totalorder %s2266_s16, %s2266_s16 }
   0x6   :  { %p2273_p3 = por %p2272_p2, %p2271_p1 }
   0x8   :  { %p2274_p4 = pnand %p2273_p3, %p2267_p0 }
   0xa   :  { %2277 = shalt.err (!%p2274_p4)
}
   0xb   :  { %31 = dma.hbm_to_vmem [thread:$0]  %s2621_s1, 32, %s29_s13, [#allocation6]  }
   0xc   :  { %s2286_s19 = scalar_lea.vmem %s16_s15, 256  ;;  %p2291_p6 = scmp.lt.s32.totalorder %s16_s15, %s16_s15 }
   0xd   :  { %p2287_p5 = scmp.ne.s32.totalorder %s16_s15, %s2286_s19  ;;  %p2292_p7 = scmp.lt.s32.totalorder %s2286_s19, %s2286_s19 }
   0xf   :  { %p2293_p8 = por %p2292_p7, %p2291_p6 }
  0x11   :  { %p2294_p9 = pnand %p2293_p8, %p2287_p5 }
  0x13   :  { %2297 = shalt.err (!%p2294_p9)
}
  0x14   :  { %s2324_s20 = smov 32   ;;  %s2325_s21 = smov 2  }
  0x15   :  { %21 = dma.hbm_to_vmem [thread:$0]  %s2620_s0, 256, %s16_s15, [#allocation4], %s2324_s20, %s2324_s20, %s2325_s21  }
  0x16   :  { %s2326_s24 = smov [#allocation7]  }
  0x17   :  { %s37_s25 = sshll.u32 %s2326_s24, 4  ;;  %s38_s25 = int_to_ptr.vmem [resolvable:$true] %s37_s25 }
  0x18   :  { %s2306_s26 = scalar_lea.vmem %s38_s25, 5504  ;;  %p2311_p11 = scmp.lt.s32.totalorder %s38_s25, %s38_s25 }
  0x19   :  { %p2307_p10 = scmp.ne.s32.totalorder %s38_s25, %s2306_s26  ;;  %p2312_p12 = scmp.lt.s32.totalorder %s2306_s26, %s2306_s26 }
  0x1b   :  { %p2313_p13 = por %p2312_p12, %p2311_p11 }
  0x1d   :  { %p2314_p0 = pnand %p2313_p13, %p2307_p10 }
  0x1f   :  { %2317 = shalt.err (!%p2314_p0)
}
  0x20   :  { %s2327_s1 = smov 128   ;;  %s2328_s27 = smov 8  }
  0x21   :  { %43 = dma.hbm_to_vmem [thread:$0]  %s2622_s2, 5504, %s38_s25, [#allocation6], %s2327_s1, %s2327_s1, %s2328_s27  }
  0x22   :  { %2318 = dma.done.wait [#allocation4], 256  }
  0x23   :  { %2319 = vsyncadd [#allocation4], 4294967040 }
  0x24   :  { %2320 = dma.done.wait [#allocation6], 5536  }
  0x25   :  { %2321 = vsyncadd [#allocation6], 4294961760  ;;  %v76_v0 = vlaneseq  ;;  %v2329_v1 = vmov 0.0   ;;  %vm2330_vm0 = vmmov 0   ;;  %v2331_v2 = vmov 1983009808  }
  0x26   :  { %1953 = vmatprep.subr.bf16.mxu0 %v2329_v1  ;;  %1955 = vmatprep.mubr.msk.bf16.mxu0 %vm2330_vm0, %v2329_v1  ;;  %v74_v3 = vunpack.c.l.s4 %v2331_v2  ;;  %v62_v7 = vld [vmem:[#allocation7] sm:$0xff]  ;;  %vm118_vm1 = vcmask 1043456   ;;  %v54_v8 = vld [vmem:[#allocation3] sm:$0x3]  ;;  %v55_v9 = vld [vmem:[#allocation3 + $0x2] sm:$0x3] }
  0x27   :  { %v77_v4 = vshrl.u32 %v76_v0, 7  ;;  %1959 = vmatprep.subr.bf16.mxu1 %v2329_v1  ;;  %1961 = vmatprep.mubr.msk.bf16.mxu1 %vm2330_vm0, %v2329_v1  ;;  %v108_v10 = vpack.c.bf16 %v62_v7, %v62_v7  ;;  %v56_v11 = vld [vmem:[#allocation3 + $0x4] sm:$0x3]  ;;  %v57_v12 = vld [vmem:[#allocation3 + $0x6] sm:$0x3]  ;;  %v71_v14 = vcombine.low %v54_v8, %v55_v9  ;;  %vm114_vm2 = vcmask 64512  }
  0x28   :  { %v75_v5 = vunpack.c.0.s8 %v74_v3  ;;  %v58_v13 = vld [vmem:[#allocation3 + $0x8] sm:$0x3]  ;;  %v59_v15 = vld [vmem:[#allocation3 + $0xa] sm:$0x3]  ;;  %v60_v16 = vld [vmem:[#allocation3 + $0xc] sm:$0x3]  ;;  %v72_v18 = vcombine.low %v56_v11, %v57_v12 }
  0x29   :  { %v61_v17 = vld [vmem:[#allocation3 + $0xe] sm:$0x3]  ;;  %v120_v19 = vsel %vm118_vm1, %v108_v10, 0  ;;  %v88_v21 = vcombine.low %v58_v13, %v59_v15  ;;  %v165_v29 = vld [vmem:[#allocation7 + $0x10] sm:$0xff]  ;;  %v1814_v32 = vld [vmem:[#allocation7 + $0x8] ss:$0 sm:$0xff] }
  0x2a   :  { %v78_v6 = vsub.s32 %v75_v5, %v77_v4  ;;  %v89_v22 = vcombine.low %v60_v16, %v61_v17  ;;  %1954 = vmatpush3.bf16.msra.mxu0 %v120_v19  ;;  %v166_v30 = vld [vmem:[#allocation7 + $0x18] sm:$0xff]  ;;  %v274_v38 = vld [vmem:[#allocation7 + $0x50] sm:$0xff]  ;;  %vm174_vm3 = vcmask 130048   ;;  %v272_v45 = vld [vmem:[#allocation7 + $0x40] sm:$0xff]  ;;  %v2332_v51 = vmov 0  }
  0x2b   :  { %1965 = vmatprep.subr.bf16.mxu0 %v2329_v1  ;;  %v168_v31 = vpack.c.bf16 %v166_v30, %v165_v29  ;;  %v275_v39 = vld [vmem:[#allocation7 + $0x58] sm:$0xff]  ;;  %v273_v46 = vld [vmem:[#allocation7 + $0x48] sm:$0xff]  ;;  %v220_v49 = vld [vmem:[#allocation7 + $0x30] sm:$0xff]  ;;  %vm295_vm4 = vcmask 261120   ;;  %vm427_vm5 = vcmask 254976   ;;  %vm1540_vm6 = vcmask 1041408  }
  0x2c   :  { %v79_v20 = vrot.slane %v71_v14, %v78_v6  ;;  %v86_v23 = vrot.slane %v72_v18, %v78_v6  ;;  %v96_v24 = vrot.slane %v88_v21, %v78_v6  ;;  %v103_v25 = vrot.slane %v89_v22, %v78_v6  ;;  %v219_v48 = vld [vmem:[#allocation7 + $0x28] sm:$0xff]  ;;  %v1816_v53 = vld [vmem:[#allocation7 + $0x20] ss:$0 sm:$0xff]  ;;  %v286_v61 = vld [vmem:[#allocation7 + $0x98] sm:$0xff] }
  0x2d   :  { %1960 = vmatpush3.bf16.msra.mxu1 %v168_v31  ;;  %v2372_v43 = vpack.c.bf16 %v275_v39, %v274_v38  ;;  %v2379_v47 = vpack.c.bf16 %v273_v46, %v272_v45  ;;  %v222_v50 = vpack.c.bf16 %v220_v49, %v219_v48  ;;  %v287_v62 = vld [vmem:[#allocation7 + $0xa0] sm:$0xff]  ;;  %v284_v3 = vld [vmem:[#allocation7 + $0x88] sm:$0xff]  ;;  %v285_v4 = vld [vmem:[#allocation7 + $0x90] sm:$0xff]  ;;  %vm1536_vm7 = vcmask 31744  }
  0x2e   :  { %v87_v26 = vcombine.low %v79_v20, %v86_v23  ;;  %v104_v27 = vcombine.low %v96_v24, %v103_v25  ;;  %1971 = vmatprep.subr.bf16.mxu1 %v2329_v1  ;;  %v2389_v0 = vpack.c.bf16 %v287_v62, %v286_v61  ;;  %v2393_v6 = vpack.c.bf16 %v285_v4, %v284_v3  ;;  %v280_v7 = vld [vmem:[#allocation7 + $0x70] sm:$0xff]  ;;  %v281_v8 = vld [vmem:[#allocation7 + $0x78] sm:$0xff]  ;;  %v278_v9 = vld [vmem:[#allocation7 + $0x60] sm:$0xff] }
  0x2f   :  { %v2397_v10 = vpack.c.bf16 %v281_v8, %v280_v7  ;;  %v279_v11 = vld [vmem:[#allocation7 + $0x68] sm:$0xff]  ;;  %v1818_v13 = vld [vmem:[#allocation7 + $0x38] ss:$0 sm:$0xff]  ;;  %vm1759_vm8 = vcmask 293888   ;;  %vm1806_vm9 = vcmask 1024  }
  0x30   :  { %v107_v28 = vpack.c.bf16 %v104_v27, %v87_v26  ;;  %v2404_v12 = vpack.c.bf16 %v279_v11, %v278_v9  ;;  %v2430_v27 = vld [vmem:[#allocation7 + $0x80] ss:$0 sm:$0xff] }
  0x32   :  { %1956 = vmatmul.mubr.msk.bf16.vlgmr.msra.gmra.mxu0 %vm114_vm2, %v107_v28 }
  0x33   :  { %1967 = vmatprep.mubr.msk.bf16.mxu0 %vm2330_vm0, %v2329_v1  ;;  %1966 = vmatpush3.bf16.msra.mxu0 %v222_v50 }
  0x34   :  { %1979 = vmatprep.subr.bf16.mxu0 %v2329_v1 }
  0xf2   :  { %v156_v33 = vpop.f32.mrf.mxu0 }
  0xf3   :  { %v157_v35 = vadd.f32 %v1814_v32, %v156_v33 }
  0xf4   :  { %v1957_v34 = vpop.f32.mrf.mxu0 }
  0xf5   :  { %v163_v41 = vmax.f32 %v157_v35, 0.0 }
  0xf6   :  { %v159_v36 = vpop.f32.mrf.mxu0 }
  0xf7   :  { %v160_v37 = vadd.f32 %v1814_v32, %v159_v36 }
  0xf8   :  { %v1958_v40 = vpop.f32.mrf.mxu0 }
  0xf9   :  { %v164_v42 = vmax.f32 %v160_v37, 0.0 }
  0xfb   :  { %v167_v44 = vpack.c.bf16 %v164_v42, %v163_v41 }
  0xfd   :  { %1962 = vmatmul.mubr.msk.bf16.vlgmr.msra.gmra.mxu1 %vm174_vm3, %v167_v44 }
  0xfe   :  { %1972 = vmatpush3.bf16.msra.mxu1 %v2372_v43  ;;  %1975 = vmatprep.mubr.msk.bf16.mxu1 %vm2330_vm0, %v2329_v1 }
  0xff   :  { %1973 = vmatprep.subr.bf16.mxu1 %v2329_v1 }
 0x102   :  { %1974 = vmatpush3.bf16.msra.mxu1 %v2379_v47 }
 0x103   :  { %1987 = vmatprep.subr.bf16.mxu1 %v2329_v1 }
 0x105   :  { %1976 = vmatmul.mubr.bf16.vlgmr.msra.gmra.mxu1 %v2332_v51 }
 0x106   :  { %1991 = vmatprep.mubr.msk.bf16.mxu1 %vm2330_vm0, %v2329_v1  ;;  %1988 = vmatpush3.bf16.msra.mxu1 %v2397_v10 }
 0x107   :  { %1989 = vmatprep.subr.bf16.mxu1 %v2329_v1 }
 0x10a   :  { %1990 = vmatpush3.bf16.msra.mxu1 %v2404_v12 }
 0x10b   :  { %2003 = vmatprep.subr.bf16.mxu1 %v2329_v1 }
 0x1bd   :  { %v212_v52 = vpop.f32.mrf.mxu1 }
 0x1be   :  { %v213_v56 = vadd.f32 %v1816_v53, %v212_v52 }
 0x1bf   :  { %v1963_v54 = vpop.f32.mrf.mxu1 }
 0x1c1   :  { %v215_v55 = vpop.f32.mrf.mxu1 }
 0x1c2   :  { %v216_v57 = vadd.f32 %v1816_v53, %v215_v55 }
 0x1c3   :  { %v1964_v58 = vpop.f32.mrf.mxu1 }
 0x1c4   :  { %v221_v59 = vpack.c.bf16 %v216_v57, %v213_v56 }
 0x1c5   :  { %v333_v60 = vpop.f32.mrf.mxu1 }
 0x1c6   :  { %1968 = vmatmul.mubr.msk.bf16.vlgmr.msra.gmra.mxu0 %vm174_vm3, %v221_v59 }
 0x1c7   :  { %1983 = vmatprep.mubr.msk.bf16.mxu0 %vm2330_vm0, %v2329_v1  ;;  %v1977_v63 = vpop.f32.mrf.mxu1  ;;  %1980 = vmatpush3.bf16.msra.mxu0 %v2389_v0 }
 0x1c8   :  { %1981 = vmatprep.subr.bf16.mxu0 %v2329_v1 }
 0x1c9   :  { %v336_v2 = vpop.f32.mrf.mxu1 }
 0x1cb   :  { %v1978_v5 = vpop.f32.mrf.mxu1  ;;  %1982 = vmatpush3.bf16.msra.mxu0 %v2393_v6 }
 0x1cc   :  { %1995 = vmatprep.subr.bf16.mxu0 %v2329_v1 }
 0x1ce   :  { %1984 = vmatmul.mubr.bf16.vlgmr.msra.gmra.mxu0 %v2332_v51 }
 0x1cf   :  { %1996 = vmatpush3.bf16.msra.mxu0 %v2372_v43  ;;  %1999 = vmatprep.mubr.msk.bf16.mxu0 %vm2330_vm0, %v2329_v1 }
 0x1d0   :  { %1997 = vmatprep.subr.bf16.mxu0 %v2329_v1 }
 0x1d3   :  { %1998 = vmatpush3.bf16.msra.mxu0 %v2379_v47 }
 0x1d4   :  { %2011 = vmatprep.subr.bf16.mxu0 %v2329_v1 }
 0x286   :  { %v265_v14 = vpop.f32.mrf.mxu0 }
 0x287   :  { %v2411_v15 = vadd.f32 %v1818_v13, %v265_v14 }
 0x288   :  { %v1969_v16 = vpop.f32.mrf.mxu0 }
 0x289   :  { %v339_v17 = vadd.f32 %v333_v60, %v2411_v15 }
 0x28a   :  { %v268_v18 = vpop.f32.mrf.mxu0 }
 0x28b   :  { %2226 = vtanh.f32 %v339_v17  ;;  %v2414_v19 = vadd.f32 %v1818_v13, %v268_v18 }
 0x28c   :  { %v1970_v20 = vpop.f32.mrf.mxu0 }
 0x28e   :  { %v376_v23 = vpop.f32.mrf.mxu0 }
 0x290   :  { %v1985_v24 = vpop.f32.mrf.mxu0 }
 0x292   :  { %v379_v25 = vpop.f32.mrf.mxu0 }
 0x294   :  { %v1986_v26 = vpop.f32.mrf.mxu0 }
 0x298   :  { %v2227_v21 = vpop.eup %2226 }
 0x299   :  { %v341_v22 = vpack.c.bf16 %v2227_v21, %v2227_v21 }
 0x29b   :  { %1992 = vmatmul.mubr.msk.bf16.vlgmr.msra.gmra.mxu1 %vm295_vm4, %v341_v22  ;;  %2000 = vmatmul.mubr.msk.bf16.vlgmr.msra.gmra.mxu0 %vm295_vm4, %v341_v22 }
 0x29c   :  { %2004 = vmatpush3.bf16.msra.mxu1 %v2389_v0  ;;  %2012 = vmatpush3.bf16.msra.mxu0 %v2397_v10 }
 0x29d   :  { %2005 = vmatprep.subr.bf16.mxu1 %v2329_v1  ;;  %2013 = vmatprep.subr.bf16.mxu0 %v2329_v1 }
 0x29e   :  { %2007 = vmatprep.mubr.msk.bf16.mxu1 %vm2330_vm0, %v2329_v1  ;;  %2015 = vmatprep.mubr.msk.bf16.mxu0 %vm2330_vm0, %v2329_v1 }
 0x2a0   :  { %2006 = vmatpush3.bf16.msra.mxu1 %v2393_v6  ;;  %2014 = vmatpush3.bf16.msra.mxu0 %v2404_v12 }
 0x2a1   :  { %2019 = vmatprep.subr.bf16.mxu1 %v2329_v1  ;;  %2027 = vmatprep.subr.bf16.mxu0 %v2329_v1 }
 0x35b   :  { %v419_v28 = vpop.f32.mrf.mxu1  ;;  %v463_v29 = vpop.f32.mrf.mxu0 }
 0x35c   :  { %v420_v30 = vadd.f32 %v419_v28, %v376_v23  ;;  %v470_v31 = vrot.slane %v463_v29, 6 }
 0x35d   :  { %v1993_v32 = vpop.f32.mrf.mxu1  ;;  %v2001_v33 = vpop.f32.mrf.mxu0 }
 0x35e   :  { %v425_v34 = vadd.f32 %v2430_v27, %v420_v30  ;;  %v472_v35 = vadd.f32 %v470_v31, %v2411_v15 }
 0x35f   :  { %v422_v36 = vpop.f32.mrf.mxu1  ;;  %v466_v37 = vpop.f32.mrf.mxu0 }
 0x360   :  { %2228 = vtanh.f32 %v425_v34 }
 0x361   :  { %2230 = vtanh.f32 %v472_v35  ;;  %v1994_v38 = vpop.f32.mrf.mxu1  ;;  %v2002_v39 = vpop.f32.mrf.mxu0 }
 0x36d   :  { %v2229_v40 = vpop.eup %2228 }
 0x36e   :  { %v2231_v41 = vpop.eup %2230  ;;  %428 = vst.msk [vmem:[#allocation2] sm:$0x3] %vm427_vm5, %v2229_v40  ;;  %v475_v42 = vpack.c.bf16 %v2229_v40, %v2229_v40 }
 0x36f   :  { %v474_v44 = vpack.c.bf16 %v2231_v41, %v2231_v41 }
 0x370   :  { %2008 = vmatmul.mubr.msk.bf16.vlgmr.msra.gmra.mxu1 %vm295_vm4, %v475_v42 }
 0x371   :  { %v520_v45 = vrot.slane %v474_v44, 1  ;;  %2020 = vmatpush3.bf16.msra.mxu1 %v2372_v43  ;;  %2023 = vmatprep.mubr.msk.bf16.mxu1 %vm2330_vm0, %v2329_v1 }
 0x372   :  { %2021 = vmatprep.subr.bf16.mxu1 %v2329_v1 }
 0x373   :  { %2016 = vmatmul.mubr.msk.bf16.vlgmr.msra.gmra.mxu0 %vm295_vm4, %v520_v45 }
 0x374   :  { %2028 = vmatpush3.bf16.msra.mxu0 %v2389_v0  ;;  %2031 = vmatprep.mubr.msk.bf16.mxu0 %vm2330_vm0, %v2329_v1 }
 0x375   :  { %2022 = vmatpush3.bf16.msra.mxu1 %v2379_v47  ;;  %2029 = vmatprep.subr.bf16.mxu0 %v2329_v1 }
 0x376   :  { %2035 = vmatprep.subr.bf16.mxu1 %v2329_v1 }
 0x378   :  { %2024 = vmatmul.mubr.msk.bf16.vlgmr.msra.gmra.mxu1 %vm295_vm4, %v520_v45  ;;  %2030 = vmatpush3.bf16.msra.mxu0 %v2393_v6 }
 0x379   :  { %2043 = vmatprep.subr.bf16.mxu0 %v2329_v1  ;;  %2036 = vmatpush3.bf16.msra.mxu1 %v2397_v10 }
 0x37a   :  { %2037 = vmatprep.subr.bf16.mxu1 %v2329_v1  ;;  %2039 = vmatprep.mubr.msk.bf16.mxu1 %vm2330_vm0, %v2329_v1 }
 0x37d   :  { %2038 = vmatpush3.bf16.msra.mxu1 %v2404_v12 }
 0x37e   :  { %2051 = vmatprep.subr.bf16.mxu1 %v2329_v1 }
 0x430   :  { %v513_v46 = vpop.f32.mrf.mxu1 }
 0x432   :  { %v2009_v48 = vpop.f32.mrf.mxu1 }
 0x433   :  { %v558_v49 = vpop.f32.mrf.mxu0 }
 0x434   :  { %v559_v50 = vadd.f32 %v558_v49, %v513_v46  ;;  %v516_v51 = vpop.f32.mrf.mxu1 }
 0x435   :  { %v2017_v52 = vpop.f32.mrf.mxu0 }
 0x436   :  { %v564_v53 = vadd.f32 %v2430_v27, %v559_v50  ;;  %v2010_v54 = vpop.f32.mrf.mxu1 }
 0x437   :  { %v561_v55 = vpop.f32.mrf.mxu0 }
 0x438   :  { %2232 = vtanh.f32 %v564_v53  ;;  %v601_v56 = vpop.f32.mrf.mxu1 }
 0x439   :  { %v2018_v57 = vpop.f32.mrf.mxu0  ;;  %v608_v58 = vrot.slane %v601_v56, 4 }
 0x43a   :  { %v2025_v59 = vpop.f32.mrf.mxu1 }
 0x43b   :  { %v610_v60 = vadd.f32 %v608_v58, %v2411_v15 }
 0x43c   :  { %v604_v61 = vpop.f32.mrf.mxu1 }
 0x43d   :  { %2234 = vtanh.f32 %v610_v60 }
 0x43e   :  { %v2026_v62 = vpop.f32.mrf.mxu1 }
 0x445   :  { %v2233_v63 = vpop.eup %2232 }
 0x446   :  { %566 = vst.msk [vmem:[#allocation2 + $0x2] sm:$0x3] %vm427_vm5, %v2233_v63  ;;  %v613_v2 = vpack.c.bf16 %v2233_v63, %v2233_v63 }
 0x448   :  { %2032 = vmatmul.mubr.msk.bf16.vlgmr.msra.gmra.mxu0 %vm295_vm4, %v613_v2 }
 0x449   :  { %2044 = vmatpush3.bf16.msra.mxu0 %v2372_v43  ;;  %2047 = vmatprep.mubr.msk.bf16.mxu0 %vm2330_vm0, %v2329_v1 }
 0x44a   :  { %v2235_v3 = vpop.eup %2234  ;;  %2045 = vmatprep.subr.bf16.mxu0 %v2329_v1 }
 0x44b   :  { %v612_v4 = vpack.c.bf16 %v2235_v3, %v2235_v3 }
 0x44d   :  { %v658_v5 = vrot.slane %v612_v4, 2  ;;  %2046 = vmatpush3.bf16.msra.mxu0 %v2379_v47 }
 0x44e   :  { %2059 = vmatprep.subr.bf16.mxu0 %v2329_v1 }
 0x44f   :  { %2040 = vmatmul.mubr.msk.bf16.vlgmr.msra.gmra.mxu1 %vm295_vm4, %v658_v5 }
 0x450   :  { %2048 = vmatmul.mubr.msk.bf16.vlgmr.msra.gmra.mxu0 %vm295_vm4, %v658_v5  ;;  %2052 = vmatpush3.bf16.msra.mxu1 %v2389_v0 }
 0x451   :  { %2060 = vmatpush3.bf16.msra.mxu0 %v2397_v10  ;;  %2053 = vmatprep.subr.bf16.mxu1 %v2329_v1 }
 0x452   :  { %2061 = vmatprep.subr.bf16.mxu0 %v2329_v1  ;;  %2055 = vmatprep.mubr.msk.bf16.mxu1 %vm2330_vm0, %v2329_v1 }
 0x453   :  { %2063 = vmatprep.mubr.msk.bf16.mxu0 %vm2330_vm0, %v2329_v1 }
 0x454   :  { %2054 = vmatpush3.bf16.msra.mxu1 %v2393_v6 }
 0x455   :  { %2062 = vmatpush3.bf16.msra.mxu0 %v2404_v12  ;;  %2067 = vmatprep.subr.bf16.mxu1 %v2329_v1 }
 0x456   :  { %2075 = vmatprep.subr.bf16.mxu0 %v2329_v1 }
 0x508   :  { %v651_v7 = vpop.f32.mrf.mxu0 }
 0x50a   :  { %v2033_v8 = vpop.f32.mrf.mxu0 }
 0x50c   :  { %v654_v9 = vpop.f32.mrf.mxu0 }
 0x50e   :  { %v2034_v11 = vpop.f32.mrf.mxu0 }
 0x50f   :  { %v696_v13 = vpop.f32.mrf.mxu1 }
 0x510   :  { %v697_v14 = vadd.f32 %v696_v13, %v651_v7  ;;  %v739_v16 = vpop.f32.mrf.mxu0 }
 0x511   :  { %v746_v17 = vrot.slane %v739_v16, 2  ;;  %v2041_v18 = vpop.f32.mrf.mxu1 }
 0x512   :  { %v702_v20 = vadd.f32 %v2430_v27, %v697_v14  ;;  %v2049_v21 = vpop.f32.mrf.mxu0 }
 0x513   :  { %v748_v22 = vadd.f32 %v746_v17, %v2411_v15  ;;  %v699_v23 = vpop.f32.mrf.mxu1 }
 0x514   :  { %2236 = vtanh.f32 %v702_v20  ;;  %v742_v24 = vpop.f32.mrf.mxu0 }
 0x515   :  { %2238 = vtanh.f32 %v748_v22  ;;  %v2042_v25 = vpop.f32.mrf.mxu1 }
 0x516   :  { %v2050_v26 = vpop.f32.mrf.mxu0 }
 0x521   :  { %v2237_v28 = vpop.eup %2236 }
 0x522   :  { %v2239_v29 = vpop.eup %2238  ;;  %704 = vst.msk [vmem:[#allocation2 + $0x4] sm:$0x3] %vm427_vm5, %v2237_v28  ;;  %v751_v30 = vpack.c.bf16 %v2237_v28, %v2237_v28 }
 0x523   :  { %v750_v31 = vpack.c.bf16 %v2239_v29, %v2239_v29 }
 0x524   :  { %2056 = vmatmul.mubr.msk.bf16.vlgmr.msra.gmra.mxu1 %vm295_vm4, %v751_v30 }
 0x525   :  { %v796_v32 = vrot.slane %v750_v31, 3  ;;  %2068 = vmatpush3.bf16.msra.mxu1 %v2372_v43  ;;  %2071 = vmatprep.mubr.msk.bf16.mxu1 %vm2330_vm0, %v2329_v1 }
 0x526   :  { %2069 = vmatprep.subr.bf16.mxu1 %v2329_v1 }
 0x527   :  { %2064 = vmatmul.mubr.msk.bf16.vlgmr.msra.gmra.mxu0 %vm295_vm4, %v796_v32 }
 0x528   :  { %2076 = vmatpush3.bf16.msra.mxu0 %v2389_v0  ;;  %2079 = vmatprep.mubr.msk.bf16.mxu0 %vm2330_vm0, %v2329_v1 }
 0x529   :  { %2070 = vmatpush3.bf16.msra.mxu1 %v2379_v47  ;;  %2077 = vmatprep.subr.bf16.mxu0 %v2329_v1 }
 0x52a   :  { %2083 = vmatprep.subr.bf16.mxu1 %v2329_v1 }
 0x52c   :  { %2072 = vmatmul.mubr.msk.bf16.vlgmr.msra.gmra.mxu1 %vm295_vm4, %v796_v32  ;;  %2078 = vmatpush3.bf16.msra.mxu0 %v2393_v6 }
 0x52d   :  { %2084 = vmatpush3.bf16.msra.mxu1 %v2397_v10  ;;  %2091 = vmatprep.subr.bf16.mxu0 %v2329_v1 }
 0x52e   :  { %2085 = vmatprep.subr.bf16.mxu1 %v2329_v1  ;;  %2087 = vmatprep.mubr.msk.bf16.mxu1 %vm2330_vm0, %v2329_v1 }
 0x531   :  { %2086 = vmatpush3.bf16.msra.mxu1 %v2404_v12 }
 0x532   :  { %2099 = vmatprep.subr.bf16.mxu1 %v2329_v1 }
 0x5e4   :  { %v789_v15 = vpop.f32.mrf.mxu1 }
 0x5e6   :  { %v2057_v33 = vpop.f32.mrf.mxu1 }
 0x5e7   :  { %v834_v34 = vpop.f32.mrf.mxu0 }
 0x5e8   :  { %v835_v35 = vadd.f32 %v834_v34, %v789_v15  ;;  %v792_v36 = vpop.f32.mrf.mxu1 }
 0x5e9   :  { %v2065_v37 = vpop.f32.mrf.mxu0 }
 0x5ea   :  { %v840_v38 = vadd.f32 %v2430_v27, %v835_v35  ;;  %v2058_v39 = vpop.f32.mrf.mxu1 }
 0x5eb   :  { %v837_v40 = vpop.f32.mrf.mxu0 }
 0x5ec   :  { %2240 = vtanh.f32 %v840_v38  ;;  %v877_v41 = vpop.f32.mrf.mxu1 }
 0x5ed   :  { %v2066_v42 = vpop.f32.mrf.mxu0  ;;  %v883_v44 = vadd.f32 %v877_v41, %v2414_v19 }
 0x5ee   :  { %v2073_v45 = vpop.f32.mrf.mxu1 }
 0x5ef   :  { %2242 = vtanh.f32 %v883_v44 }
 0x5f0   :  { %v880_v46 = vpop.f32.mrf.mxu1 }
 0x5f2   :  { %v2074_v48 = vpop.f32.mrf.mxu1 }
 0x5f9   :  { %v2241_v49 = vpop.eup %2240 }
 0x5fa   :  { %842 = vst.msk [vmem:[#allocation2 + $0x6] sm:$0x3] %vm427_vm5, %v2241_v49  ;;  %v886_v50 = vpack.c.bf16 %v2241_v49, %v2241_v49 }
 0x5fc   :  { %v2243_v51 = vpop.eup %2242  ;;  %2080 = vmatmul.mubr.msk.bf16.vlgmr.msra.gmra.mxu0 %vm295_vm4, %v886_v50 }
 0x5fd   :  { %v885_v52 = vpack.c.bf16 %v2243_v51, %v2243_v51  ;;  %2092 = vmatpush3.bf16.msra.mxu0 %v2372_v43  ;;  %2095 = vmatprep.mubr.msk.bf16.mxu0 %vm2330_vm0, %v2329_v1 }
 0x5fe   :  { %2093 = vmatprep.subr.bf16.mxu0 %v2329_v1 }
 0x5ff   :  { %2088 = vmatmul.mubr.msk.bf16.vlgmr.msra.gmra.mxu1 %vm295_vm4, %v885_v52 }
 0x600   :  { %2100 = vmatpush3.bf16.msra.mxu1 %v2389_v0  ;;  %2103 = vmatprep.mubr.msk.bf16.mxu1 %vm2330_vm0, %v2329_v1 }
 0x601   :  { %2094 = vmatpush3.bf16.msra.mxu0 %v2379_v47  ;;  %2101 = vmatprep.subr.bf16.mxu1 %v2329_v1 }
 0x602   :  { %2107 = vmatprep.subr.bf16.mxu0 %v2329_v1 }
 0x604   :  { %2096 = vmatmul.mubr.msk.bf16.vlgmr.msra.gmra.mxu0 %vm295_vm4, %v885_v52  ;;  %2102 = vmatpush3.bf16.msra.mxu1 %v2393_v6 }
 0x605   :  { %2108 = vmatpush3.bf16.msra.mxu0 %v2397_v10  ;;  %2115 = vmatprep.subr.bf16.mxu1 %v2329_v1 }
 0x606   :  { %2109 = vmatprep.subr.bf16.mxu0 %v2329_v1  ;;  %2111 = vmatprep.mubr.msk.bf16.mxu0 %vm2330_vm0, %v2329_v1 }
 0x609   :  { %2110 = vmatpush3.bf16.msra.mxu0 %v2404_v12 }
 0x60a   :  { %2123 = vmatprep.subr.bf16.mxu0 %v2329_v1 }
 0x6bc   :  { %v924_v53 = vpop.f32.mrf.mxu0 }
 0x6be   :  { %v2081_v54 = vpop.f32.mrf.mxu0 }
 0x6bf   :  { %v967_v55 = vpop.f32.mrf.mxu1 }
 0x6c0   :  { %v927_v56 = vpop.f32.mrf.mxu0  ;;  %v968_v57 = vadd.f32 %v967_v55, %v924_v53  ;;  %v1395_v55 = vld [vmem:[#allocation7 + $0xc0] sm:$0xff] }
 0x6c1   :  { %v2089_v58 = vpop.f32.mrf.mxu1  ;;  %v1392_v56 = vld [vmem:[#allocation7 + $0xa8] sm:$0xff] }
 0x6c2   :  { %v973_v59 = vadd.f32 %v2430_v27, %v968_v57  ;;  %v2082_v60 = vpop.f32.mrf.mxu0  ;;  %v1393_v58 = vld [vmem:[#allocation7 + $0xb0] sm:$0xff] }
 0x6c3   :  { %v970_v61 = vpop.f32.mrf.mxu1 }
 0x6c4   :  { %2244 = vtanh.f32 %v973_v59  ;;  %v1010_v62 = vpop.f32.mrf.mxu0  ;;  %v1397_v59 = vpack.c.bf16 %v1393_v58, %v1392_v56 }
 0x6c5   :  { %v1017_v63 = vrot.slane %v1010_v62, 6  ;;  %v2090_v2 = vpop.f32.mrf.mxu1 }
 0x6c6   :  { %v2097_v3 = vpop.f32.mrf.mxu0 }
 0x6c7   :  { %v1019_v4 = vadd.f32 %v1017_v63, %v2414_v19 }
 0x6c8   :  { %v1013_v5 = vpop.f32.mrf.mxu0 }
 0x6c9   :  { %2246 = vtanh.f32 %v1019_v4 }
 0x6ca   :  { %v2098_v7 = vpop.f32.mrf.mxu0 }
 0x6d1   :  { %v2245_v8 = vpop.eup %2244 }
 0x6d2   :  { %975 = vst.msk [vmem:[#allocation2 + $0x8] sm:$0x3] %vm427_vm5, %v2245_v8  ;;  %v1022_v9 = vpack.c.bf16 %v2245_v8, %v2245_v8 }
 0x6d4   :  { %2104 = vmatmul.mubr.msk.bf16.vlgmr.msra.gmra.mxu1 %vm295_vm4, %v1022_v9 }
 0x6d5   :  { %2116 = vmatpush3.bf16.msra.mxu1 %v2372_v43  ;;  %2119 = vmatprep.mubr.msk.bf16.mxu1 %vm2330_vm0, %v2329_v1 }
 0x6d6   :  { %v2247_v11 = vpop.eup %2246  ;;  %2117 = vmatprep.subr.bf16.mxu1 %v2329_v1 }
 0x6d7   :  { %v1021_v13 = vpack.c.bf16 %v2247_v11, %v2247_v11  ;;  %v1528_v11 = vld [vmem:[#allocation7 + $0xf8] sm:$0xf] }
 0x6d9   :  { %v1067_v14 = vrot.slane %v1021_v13, 1  ;;  %2118 = vmatpush3.bf16.msra.mxu1 %v2379_v47  ;;  %v1530_v13 = vpack.c.bf16 %v1528_v11, %v1528_v11 }
 0x6da   :  { %2131 = vmatprep.subr.bf16.mxu1 %v2329_v1 }
 0x6db   :  { %2112 = vmatmul.mubr.msk.bf16.vlgmr.msra.gmra.mxu0 %vm295_vm4, %v1067_v14 }
 0x6dc   :  { %2120 = vmatmul.mubr.msk.bf16.vlgmr.msra.gmra.mxu1 %vm295_vm4, %v1067_v14  ;;  %2124 = vmatpush3.bf16.msra.mxu0 %v2389_v0  ;;  %v1390_v14 = vld [vmem:[#allocation2] sm:$0xff] }
 0x6dd   :  { %2125 = vmatprep.subr.bf16.mxu0 %v2329_v1  ;;  %2132 = vmatpush3.bf16.msra.mxu1 %v2397_v10 }
 0x6de   :  { %2127 = vmatprep.mubr.msk.bf16.mxu0 %vm2330_vm0, %v2329_v1  ;;  %2133 = vmatprep.subr.bf16.mxu1 %v2329_v1 }
 0x6df   :  { %2135 = vmatprep.mubr.msk.bf16.mxu1 %vm2330_vm0, %v2329_v1 }
 0x6e0   :  { %2126 = vmatpush3.bf16.msra.mxu0 %v2393_v6 }
 0x6e1   :  { %2139 = vmatprep.subr.bf16.mxu0 %v2329_v1  ;;  %2134 = vmatpush3.bf16.msra.mxu1 %v2404_v12 }
 0x6e2   :  { %2147 = vmatprep.subr.bf16.mxu1 %v2329_v1 }
 0x794   :  { %v1060_v16 = vpop.f32.mrf.mxu1 }
 0x796   :  { %v2105_v17 = vpop.f32.mrf.mxu1 }
 0x798   :  { %v1063_v18 = vpop.f32.mrf.mxu1 }
 0x799   :  { %v1542_v18 = vsel %vm1540_vm6, %v1530_v13, 0 }
 0x79a   :  { %v2106_v20 = vpop.f32.mrf.mxu1 }
 0x79b   :  { %v1105_v21 = vpop.f32.mrf.mxu0 }
 0x79c   :  { %v1106_v22 = vadd.f32 %v1105_v21, %v1060_v16  ;;  %v1148_v23 = vpop.f32.mrf.mxu1  ;;  %v1452_v21 = vld [vmem:[#allocation7 + $0xe0] sm:$0xff] }
 0x79d   :  { %v2113_v24 = vpop.f32.mrf.mxu0  ;;  %v1155_v25 = vrot.slane %v1148_v23, 4 }
 0x79e   :  { %v1111_v26 = vadd.f32 %v2430_v27, %v1106_v22  ;;  %v2121_v28 = vpop.f32.mrf.mxu1  ;;  %v1453_v22 = vld [vmem:[#allocation7 + $0xe8] sm:$0xff]  ;;  %v1450_v24 = vld [vmem:[#allocation7 + $0xd0] sm:$0xff] }
 0x79f   :  { %v1157_v29 = vadd.f32 %v1155_v25, %v2414_v19  ;;  %v1108_v30 = vpop.f32.mrf.mxu0  ;;  %v1456_v23 = vpack.c.bf16 %v1453_v22, %v1452_v21  ;;  %v1451_v25 = vld [vmem:[#allocation7 + $0xd8] sm:$0xff]  ;;  %v1843_v28 = vld [vmem:[#allocation7 + $0xc8] ss:$0 sm:$0xff]  ;;  %v1749_v22 = vld [vmem:[#allocation7 + $0x150] sm:$0xf] }
 0x7a0   :  { %2248 = vtanh.f32 %v1111_v26  ;;  %v1151_v31 = vpop.f32.mrf.mxu1  ;;  %v1455_v26 = vpack.c.bf16 %v1451_v25, %v1450_v24  ;;  %v1747_v25 = vld [vmem:[#allocation7 + $0x140] sm:$0xff] }
 0x7a1   :  { %2250 = vtanh.f32 %v1157_v29  ;;  %v2114_v32 = vpop.f32.mrf.mxu0  ;;  %v1585_v31 = vld [vmem:[#allocation7 + $0x100] sm:$0xf] }
 0x7a2   :  { %v2122_v15 = vpop.f32.mrf.mxu1 }
 0x7ad   :  { %v2249_v33 = vpop.eup %2248 }
 0x7ae   :  { %v2251_v34 = vpop.eup %2250  ;;  %1113 = vst.msk [vmem:[#allocation2 + $0xa] sm:$0x3] %vm427_vm5, %v2249_v33  ;;  %v1160_v35 = vpack.c.bf16 %v2249_v33, %v2249_v33 }
 0x7af   :  { %v1159_v36 = vpack.c.bf16 %v2251_v34, %v2251_v34  ;;  %v1587_v34 = vpack.c.bf16 %v1585_v31, %v1585_v31 }
 0x7b0   :  { %2128 = vmatmul.mubr.msk.bf16.vlgmr.msra.gmra.mxu0 %vm295_vm4, %v1160_v35 }
 0x7b1   :  { %v1205_v37 = vrot.slane %v1159_v36, 2  ;;  %2140 = vmatpush3.bf16.msra.mxu0 %v2372_v43  ;;  %2143 = vmatprep.mubr.msk.bf16.mxu0 %vm2330_vm0, %v2329_v1  ;;  %v1847_v36 = vld [vmem:[#allocation7 + $0xfc] ss:$0 sm:$0xff] }
 0x7b2   :  { %2141 = vmatprep.subr.bf16.mxu0 %v2329_v1 }
 0x7b3   :  { %2136 = vmatmul.mubr.msk.bf16.vlgmr.msra.gmra.mxu1 %vm295_vm4, %v1205_v37 }
 0x7b4   :  { %2148 = vmatpush3.bf16.msra.mxu1 %v2389_v0  ;;  %2151 = vmatprep.mubr.msk.bf16.mxu1 %vm2330_vm0, %v2329_v1 }
 0x7b5   :  { %2142 = vmatpush3.bf16.msra.mxu0 %v2379_v47  ;;  %2149 = vmatprep.subr.bf16.mxu1 %v2329_v1 }
 0x7b6   :  { %2155 = vmatprep.subr.bf16.mxu0 %v2329_v1 }
 0x7b8   :  { %2144 = vmatmul.mubr.msk.bf16.vlgmr.msra.gmra.mxu0 %vm295_vm4, %v1205_v37  ;;  %2150 = vmatpush3.bf16.msra.mxu1 %v2393_v6 }
 0x7b9   :  { %2156 = vmatpush3.bf16.msra.mxu0 %v2397_v10  ;;  %2159 = vmatprep.mubr.msk.bf16.mxu0 %vm2330_vm0, %v2329_v1 }
 0x7ba   :  { %2157 = vmatprep.subr.bf16.mxu0 %v2329_v1  ;;  %2163 = vmatprep.subr.bf16.mxu1 %v2329_v1 }
 0x7bd   :  { %2158 = vmatpush3.bf16.msra.mxu0 %v2404_v12 }
 0x7be   :  { %2171 = vmatprep.subr.bf16.mxu0 %v2329_v1 }
 0x870   :  { %v1198_v43 = vpop.f32.mrf.mxu0 }
 0x872   :  { %v2129_v47 = vpop.f32.mrf.mxu0 }
 0x873   :  { %v1243_v0 = vpop.f32.mrf.mxu1 }
 0x874   :  { %v1201_v38 = vpop.f32.mrf.mxu0  ;;  %v1244_v39 = vadd.f32 %v1243_v0, %v1198_v43 }
 0x875   :  { %v2137_v40 = vpop.f32.mrf.mxu1 }
 0x876   :  { %v1249_v6 = vadd.f32 %v2430_v27, %v1244_v39  ;;  %v2130_v10 = vpop.f32.mrf.mxu0  ;;  %v1597_v39 = vsel %vm1540_vm6, %v1587_v34, 0 }
 0x877   :  { %v1246_v41 = vpop.f32.mrf.mxu1 }
 0x878   :  { %2252 = vtanh.f32 %v1249_v6  ;;  %v1286_v42 = vpop.f32.mrf.mxu0 }
 0x879   :  { %v1293_v44 = vrot.slane %v1286_v42, 2  ;;  %v2138_v45 = vpop.f32.mrf.mxu1 }
 0x87a   :  { %v2145_v46 = vpop.f32.mrf.mxu0 }
 0x87b   :  { %v1295_v48 = vadd.f32 %v1293_v44, %v2414_v19  ;;  %v1394_v19 = vld [vmem:[#allocation7 + $0xb8] sm:$0xff]  ;;  %v1646_v44 = vld [vmem:[#allocation7 + $0x128] sm:$0xf] }
 0x87c   :  { %v1289_v12 = vpop.f32.mrf.mxu0  ;;  %v1398_v57 = vpack.c.bf16 %v1395_v55, %v1394_v19  ;;  %v1648_v45 = vpack.c.bf16 %v1646_v44, %v1646_v44 }
 0x87d   :  { %2254 = vtanh.f32 %v1295_v48  ;;  %v1641_v48 = vld [vmem:[#allocation7 + $0x118] sm:$0xff]  ;;  %v1642_v12 = vld [vmem:[#allocation7 + $0x120] sm:$0xff] }
 0x87e   :  { %v2146_v49 = vpop.f32.mrf.mxu0  ;;  %v1653_v46 = vsel %vm1540_vm6, %v1648_v45, 0 }
 0x87f   :  { %v1645_v49 = vpack.c.bf16 %v1642_v12, %v1641_v48 }
 0x885   :  { %v2253_v50 = vpop.eup %2252 }
 0x886   :  { %1251 = vst.msk [vmem:[#allocation2 + $0xc] sm:$0x3] %vm427_vm5, %v2253_v50  ;;  %v1298_v51 = vpack.c.bf16 %v2253_v50, %v2253_v50  ;;  %v1639_v50 = vld [vmem:[#allocation7 + $0x108] sm:$0xff] }
 0x888   :  { %2152 = vmatmul.mubr.msk.bf16.vlgmr.msra.gmra.mxu1 %vm295_vm4, %v1298_v51  ;;  %v1640_v51 = vld [vmem:[#allocation7 + $0x110] sm:$0xff] }
 0x889   :  { %2167 = vmatprep.mubr.msk.bf16.mxu1 %vm2330_vm0, %v2329_v1  ;;  %2164 = vmatpush3.bf16.msra.mxu1 %v1398_v57 }
 0x88a   :  { %v2255_v52 = vpop.eup %2254  ;;  %2165 = vmatprep.subr.bf16.mxu1 %v2329_v1 }
 0x88b   :  { %v1297_v53 = vpack.c.bf16 %v2255_v52, %v2255_v52  ;;  %v1644_v52 = vpack.c.bf16 %v1640_v51, %v1639_v50 }
 0x88d   :  { %v1343_v54 = vrot.slane %v1297_v53, 3  ;;  %2166 = vmatpush3.bf16.msra.mxu1 %v1397_v59  ;;  %v1845_v53 = vld [vmem:[#allocation7 + $0xf0] ss:$0 sm:$0xff] }
 0x88e   :  { %2179 = vmatprep.subr.bf16.mxu1 %v2329_v1 }
 0x88f   :  { %2160 = vmatmul.mubr.msk.bf16.vlgmr.msra.gmra.mxu0 %vm295_vm4, %v1343_v54 }
 0x890   :  { %2175 = vmatprep.mubr.msk.bf16.mxu0 %vm2330_vm0, %v2329_v1  ;;  %2172 = vmatpush3.bf16.msra.mxu0 %v1456_v23  ;;  %v1753_v23 = vpack.c.bf16 %v1749_v22, %v1749_v22 }
 0x891   :  { %2173 = vmatprep.subr.bf16.mxu0 %v2329_v1 }
 0x892   :  { %v1764_v24 = vsel %vm1540_vm6, %v1753_v23, 0 }
 0x894   :  { %2174 = vmatpush3.bf16.msra.mxu0 %v1455_v26  ;;  %v1748_v26 = vld [vmem:[#allocation7 + $0x148] sm:$0xff] }
 0x895   :  { %2185 = vmatprep.subr.bf16.mxu0 %v2329_v1 }
 0x948   :  { %v1336_v60 = vpop.f32.mrf.mxu1 }
 0x94a   :  { %v2153_v61 = vpop.f32.mrf.mxu1 }
 0x94b   :  { %v1849_v61 = vld [vmem:[#allocation7 + $0x104] ss:$0 sm:$0xff] }
 0x94c   :  { %v1339_v62 = vpop.f32.mrf.mxu1 }
 0x94e   :  { %v2154_v63 = vpop.f32.mrf.mxu1 }
 0x94f   :  { %v1381_v2 = vpop.f32.mrf.mxu0 }
 0x950   :  { %v1382_v3 = vadd.f32 %v1381_v2, %v1336_v60 }
 0x951   :  { %v2161_v4 = vpop.f32.mrf.mxu0 }
 0x952   :  { %v1387_v5 = vadd.f32 %v2430_v27, %v1382_v3  ;;  %v1527_v27 = vld [vmem:[#allocation5] sm:$0x3] }
 0x953   :  { %v1384_v7 = vpop.f32.mrf.mxu0  ;;  %v1529_v20 = vpack.c.bf16 %v1527_v27, %v1527_v27 }
 0x954   :  { %2256 = vtanh.f32 %v1387_v5 }
 0x955   :  { %v2162_v8 = vpop.f32.mrf.mxu0 }
 0x961   :  { %v2257_v9 = vpop.eup %2256 }
 0x962   :  { %1389 = vst.msk [vmem:[#allocation2 + $0xe] sm:$0x3] %vm427_vm5, %v2257_v9 }
 0x969   :  { %v1391_v16 = vld [vmem:[#allocation2 + $0x8] sm:$0xff] }
 0x96a   :  { %v1396_v17 = vpack.c.bf16 %v1391_v16, %v1390_v14 }
 0x96c   :  { %2168 = vmatmul.mubr.msk.bf16.vlgmr.msra.gmra.mxu1 %vm295_vm4, %v1396_v17 }
 0x96d   :  { %2180 = vmatpush3.bf16.msra.mxu1 %v1542_v18  ;;  %2181 = vmatprep.mubr.msk.bf16.mxu1 %vm2330_vm0, %v2329_v1 }
 0x96e   :  { %2191 = vmatprep.subr.bf16.mxu1 %v2329_v1 }
 0x974   :  { %2182 = vmatmul.mubr.msk.bf16.vlgmr.msra.gmra.mxu1 %vm1536_vm7, %v1529_v20 }
 0x975   :  { %2193 = vmatprep.mubr.msk.bf16.mxu1 %vm2330_vm0, %v2329_v1  ;;  %2192 = vmatpush3.bf16.msra.mxu1 %v1653_v46 }
 0x976   :  { %2205 = vmatprep.subr.bf16.mxu1 %v2329_v1 }
 0xa2c   :  { %v1441_v29 = vpop.f32.mrf.mxu1 }
 0xa2d   :  { %v1442_v32 = vadd.f32 %v1843_v28, %v1441_v29  ;;  %v1745_v29 = vld [vmem:[#allocation7 + $0x130] sm:$0xff] }
 0xa2e   :  { %v2169_v30 = vpop.f32.mrf.mxu1 }
 0xa2f   :  { %v1448_v37 = vmax.f32 %v1442_v32, 0.0  ;;  %v1746_v30 = vld [vmem:[#allocation7 + $0x138] sm:$0xff] }
 0xa30   :  { %v1444_v15 = vpop.f32.mrf.mxu1  ;;  %v1751_v31 = vpack.c.bf16 %v1746_v30, %v1745_v29 }
 0xa31   :  { %v1445_v33 = vadd.f32 %v1843_v28, %v1444_v15  ;;  %v1752_v28 = vpack.c.bf16 %v1748_v26, %v1747_v25 }
 0xa32   :  { %v2170_v35 = vpop.f32.mrf.mxu1 }
 0xa33   :  { %v1449_v43 = vmax.f32 %v1445_v33, 0.0 }
 0xa34   :  { %v1578_v47 = vpop.f32.mrf.mxu1 }
 0xa35   :  { %v1454_v0 = vpack.c.bf16 %v1449_v43, %v1448_v37  ;;  %v1579_v38 = vadd.f32 %v1847_v36, %v1578_v47  ;;  %v1853_v36 = vld [vmem:[#allocation7 + $0x12c] ss:$0 sm:$0xff] }
 0xa36   :  { %v2183_v40 = vpop.f32.mrf.mxu1 }
 0xa37   :  { %2176 = vmatmul.mubr.msk.bf16.vlgmr.msra.gmra.mxu0 %vm295_vm4, %v1454_v0  ;;  %v1584_v6 = vmax.f32 %v1579_v38, 0.0 }
 0xa38   :  { %v1581_v10 = vpop.f32.mrf.mxu1  ;;  %2186 = vmatpush3.bf16.msra.mxu0 %v1597_v39  ;;  %2187 = vmatprep.mubr.msk.bf16.mxu0 %vm2330_vm0, %v2329_v1 }
 0xa39   :  { %2197 = vmatprep.subr.bf16.mxu0 %v2329_v1  ;;  %v1586_v42 = vpack.c.bf16 %v1584_v6, %v1584_v6 }
 0xa3a   :  { %v2184_v41 = vpop.f32.mrf.mxu1 }
 0xa3f   :  { %2188 = vmatmul.mubr.msk.bf16.vlgmr.msra.gmra.mxu0 %vm1536_vm7, %v1586_v42 }
 0xa40   :  { %2201 = vmatprep.mubr.msk.bf16.mxu0 %vm2330_vm0, %v2329_v1  ;;  %2198 = vmatpush3.bf16.msra.mxu0 %v1645_v49 }
 0xa41   :  { %2199 = vmatprep.subr.bf16.mxu0 %v2329_v1 }
 0xa44   :  { %2200 = vmatpush3.bf16.msra.mxu0 %v1644_v52 }
 0xaf7   :  { %v1499_v54 = vpop.f32.mrf.mxu0 }
 0xaf8   :  { %v1500_v19 = vadd.f32 %v1845_v53, %v1499_v54 }
 0xaf9   :  { %v2177_v55 = vpop.f32.mrf.mxu0 }
 0xafa   :  { %v1507_v56 = vrot.slane %v1500_v19, 2  ;;  %v1510_v59 = vrot.slane %v1500_v19, 4  ;;  %v1513_v63 = vrot.slane %v1500_v19, 6 }
 0xafb   :  { %v1502_v57 = vpop.f32.mrf.mxu0 }
 0xafc   :  { %v1509_v58 = vmax.f32 %v1500_v19, %v1507_v56  ;;  %v1503_v2 = vadd.f32 %v1845_v53, %v1502_v57 }
 0xafd   :  { %v2178_v60 = vpop.f32.mrf.mxu0 }
 0xafe   :  { %v1512_v62 = vmax.f32 %v1509_v58, %v1510_v59  ;;  %v1518_v9 = vrot.slane %v1503_v2, 2  ;;  %v1521_v16 = vrot.slane %v1503_v2, 4  ;;  %v1524_v27 = vrot.slane %v1503_v2, 6 }
 0xaff   :  { %v1633_v3 = vpop.f32.mrf.mxu0 }
 0xb00   :  { %v1515_v4 = vmax.f32 %v1512_v62, %v1513_v63  ;;  %v1634_v5 = vadd.f32 %v1849_v61, %v1633_v3 }
 0xb01   :  { %v2189_v7 = vpop.f32.mrf.mxu0 }
 0xb02   :  { %v1516_v8 = vmax.f32 %v1515_v4, %v1503_v2  ;;  %v1647_v11 = vpack.c.bf16 %v1634_v5, %v1634_v5 }
 0xb03   :  { %v1636_v13 = vpop.f32.mrf.mxu0 }
 0xb04   :  { %v1520_v14 = vmax.f32 %v1516_v8, %v1518_v9  ;;  %2194 = vmatmul.mubr.msk.bf16.vlgmr.msra.gmra.mxu1 %vm1536_vm7, %v1647_v11 }
 0xb05   :  { %v2190_v17 = vpop.f32.mrf.mxu0  ;;  %2211 = vmatprep.mubr.msk.bf16.mxu1 %vm2330_vm0, %v2329_v1  ;;  %2206 = vmatpush3.bf16.msra.mxu1 %v1764_v24 }
 0xb06   :  { %v1523_v18 = vmax.f32 %v1520_v14, %v1521_v16  ;;  %2207 = vmatprep.subr.bf16.mxu1 %v2329_v1 }
 0xb08   :  { %v1526_v20 = vmax.f32 %v1523_v18, %v1524_v27 }
 0xb09   :  { %2208 = vmatpush3.bf16.msra.mxu1 %v1752_v28 }
 0xb0a   :  { %v1643_v21 = vpack.c.bf16 %v1526_v20, %v1526_v20  ;;  %2209 = vmatprep.subr.bf16.mxu1 %v2329_v1  ;;  %v1854_v1 = vld [vmem:[#allocation7 + $0x154] ss:$0 sm:$0xff] }
 0xb0c   :  { %2202 = vmatmul.mubr.msk.bf16.vlgmr.msra.gmra.mxu0 %vm295_vm4, %v1643_v21 }
 0xb0d   :  { %2210 = vmatpush3.bf16.msra.mxu1 %v1751_v31 }
 0xbc4   :  { %v1689_v32 = vpop.f32.mrf.mxu1 }
 0xbc6   :  { %v2195_v15 = vpop.f32.mrf.mxu1 }
 0xbc8   :  { %v1692_v33 = vpop.f32.mrf.mxu1 }
 0xbca   :  { %v2196_v34 = vpop.f32.mrf.mxu1 }
 0xbcc   :  { %v1732_v35 = vpop.f32.mrf.mxu0 }
 0xbcd   :  { %v1733_v37 = vadd.f32 %v1732_v35, %v1689_v32 }
 0xbce   :  { %v2203_v43 = vpop.f32.mrf.mxu0 }
 0xbcf   :  { %v1743_v47 = vadd.f32 %v1853_v36, %v1733_v37 }
 0xbd0   :  { %v1735_v0 = vpop.f32.mrf.mxu0 }
 0xbd1   :  { %v1744_v38 = vmax.f32 %v1743_v47, 0.0 }
 0xbd2   :  { %v2204_v39 = vpop.f32.mrf.mxu0 }
 0xbd3   :  { %v1750_v40 = vpack.c.bf16 %v1744_v38, %v1744_v38 }
 0xbd5   :  { %2212 = vmatmul.mubr.msk.bf16.vlgmr.msra.gmra.mxu1 %vm1759_vm8, %v1750_v40 }
 0xc95   :  { %v1800_v6 = vpop.f32.mrf.mxu1 }
 0xc96   :  { %v1801_v10 = vadd.f32 %v1854_v1, %v1800_v6 }
 0xc97   :  { %v2213_v41 = vpop.f32.mrf.mxu1 }
 0xc98   :  { %1807 = vst.msk [vmem:[%s2623_s3] sm:$0x3] %vm1806_vm9, %v1801_v10 }
 0xc99   :  { %v1803_v42 = vpop.f32.mrf.mxu1 }
 0xc9b   :  { %v2214_v44 = vpop.f32.mrf.mxu1 }
 0xc9c   :  { %1812 = vsyncpa [#allocation4], 1 }
 0xc9d   :  { %1813 = vsyncpa [#allocation6], 1 }

</bundles_post_ra>
